<compile_context>
chip_gen: v5e
topology: v5e:2x2
jax: 0.10.0
libtpu: 0.0.40
codegen_flags: <defaults>
</compile_context>

<pallas_src>
import jax
import jax.numpy as jnp
from jax.experimental import pallas as pl
from jax.experimental.pallas import tpu as pltpu


def critic_kernel(s_ref, a_ref, w1s_ref, w1a_ref, b1_ref, w2_ref, b2_ref,
                  w3_ref, b3_ref, o_ref):
    # Layer 1: fused concat -> two bf16 MXU matmuls with f32 accumulation.
    s = s_ref[...].astype(jnp.bfloat16)
    a = a_ref[...].astype(jnp.bfloat16)
    h1 = jnp.dot(s, w1s_ref[...], preferred_element_type=jnp.float32)
    h1 = h1 + jnp.dot(a, w1a_ref[...], preferred_element_type=jnp.float32)
    h1 = jnp.maximum(h1 + b1_ref[...], 0.0)          # f32 bias + ReLU (VPU)

    # Layer 2: bf16 MXU matmul, f32 accumulation.
    h2 = jnp.dot(h1.astype(jnp.bfloat16), w2_ref[...],
                 preferred_element_type=jnp.float32)
    h2 = jnp.maximum(h2 + b2_ref[...], 0.0)

    # Layer 3 (512 -> 1): VPU multiply + lane reduction instead of a padded
    # N=1 MXU pass. b3 is an SMEM scalar.
    q = jnp.sum(h2 * w3_ref[...], axis=-1, keepdims=True) + b3_ref[0]
    o_ref[...] = q.astype(o_ref.dtype)


def critic_forward(state, action, params, *, block_b=256):
    """Pallas implementation of Critic.forward(state, action)."""
    w1s, w1a, b1, w2, b2, w3, b3 = params
    state_dim = state.shape[1]
    action_dim = action.shape[1]
    h1_dim = w1s.shape[1]
    h2_dim = w2.shape[1]

    batch = state.shape[0]
    # Pad batch to a sublane multiple (8), then to a multiple of the batch tile.
    b_pad = max(8, -(-batch // 8) * 8)
    tb = min(block_b, b_pad)
    b_pad = -(-b_pad // tb) * tb
    if b_pad != batch:
        state = jnp.pad(state, ((0, b_pad - batch), (0, 0)))
        action = jnp.pad(action, ((0, b_pad - batch), (0, 0)))

    grid = (b_pad // tb,)

    def resident(shape):
        # Weight/bias operands: same block every grid step -> stay VMEM-resident.
        return pl.BlockSpec(shape, lambda i: (0, 0))

    out = pl.pallas_call(
        critic_kernel,
        out_shape=jax.ShapeDtypeStruct((b_pad, 1), jnp.float32),
        grid=grid,
        in_specs=[
            pl.BlockSpec((tb, state_dim), lambda i: (i, 0)),    # state block
            pl.BlockSpec((tb, action_dim), lambda i: (i, 0)),   # action block
            resident((state_dim, h1_dim)),                      # W1[:S]  (bf16)
            resident((action_dim, h1_dim)),                     # W1[S:]  (bf16)
            resident((1, h1_dim)),                              # b1      (f32)
            resident((h1_dim, h2_dim)),                         # W2      (bf16)
            resident((1, h2_dim)),                              # b2      (f32)
            resident((1, h2_dim)),                              # W3 row  (f32)
            pl.BlockSpec(memory_space=pltpu.MemorySpace.SMEM),  # b3 scalar
        ],
        out_specs=pl.BlockSpec((tb, 1), lambda i: (i, 0)),
        compiler_params=pltpu.CompilerParams(
            dimension_semantics=("parallel",)),
    )(state, action, w1s, w1a, b1, w2, b2, w3, b3)
    return out[:batch]


def init_critic_params(key, state_dim, action_dim):
    """Mirrors nn.Linear init: U(-1/sqrt(fan_in), 1/sqrt(fan_in)).

    Weights stored transposed ([in, out]); W1 is pre-split into state/action
    halves (fused concat); W1/W2 stored in bf16 for the MXU; W3 stored as a
    (1, 512) f32 row for the VPU reduction; b3 as a (1,) SMEM scalar.
    """
    h1, h2 = 1024, 512
    k1, k2, k3 = jax.random.split(key, 3)

    def linear(k, fan_in, fan_out):
        kw, kb = jax.random.split(k)
        bound = 1.0 / (fan_in ** 0.5)
        w = jax.random.uniform(kw, (fan_in, fan_out), jnp.float32, -bound, bound)
        b = jax.random.uniform(kb, (1, fan_out), jnp.float32, -bound, bound)
        return w, b

    w1, b1 = linear(k1, state_dim + action_dim, h1)
    w2, b2 = linear(k2, h1, h2)
    w3, b3 = linear(k3, h2, 1)

    return (
        w1[:state_dim].astype(jnp.bfloat16),   # W1 state half
        w1[state_dim:].astype(jnp.bfloat16),   # W1 action half
        b1,                                    # (1, 1024) f32
        w2.astype(jnp.bfloat16),               # (1024, 512) bf16
        b2,                                    # (1, 512) f32
        w3.T,                                  # (1, 512) f32 row
        b3.reshape((1,)),                      # (1,) f32
    )


def critic_forward_ref(state, action, params):
    """Pure-JAX f32 reference (same bf16-stored weights, f32 math)."""
    w1s, w1a, b1, w2, b2, w3, b3 = params
    w1 = jnp.concatenate([w1s, w1a], axis=0).astype(jnp.float32)
    x = jnp.concatenate([state, action], axis=1)
    h1 = jax.nn.relu(x @ w1 + b1)
    h2 = jax.nn.relu(h1 @ w2.astype(jnp.float32) + b2)
    return h2 @ w3.T.astype(jnp.float32) + b3[None, :]


if __name__ == "__main__":
    key = jax.random.PRNGKey(0)
    k_params, k_state, k_action = jax.random.split(key, 3)

    batch, state_dim, action_dim = 2, 16, 8
    params = init_critic_params(k_params, state_dim, action_dim)
    state = jax.random.normal(k_state, (batch, state_dim), jnp.float32)
    action = jax.random.normal(k_action, (batch, action_dim), jnp.float32)

    q = critic_forward(state, action, params)
    jax.block_until_ready(q)

    q_ref = critic_forward_ref(state, action, params)
    assert q.shape == (batch, 1)
    # bf16 matmul operands with f32 accumulation -> relaxed tolerance vs f32 ref.
    assert jnp.allclose(q, q_ref, atol=5e-2, rtol=5e-2), (q, q_ref)

    print("KERNEL_OK")
</pallas_src>

<mosaic_0001>
module attributes {stable_mosaic.version = 11 : i64} {
  func.func @critic_kernel(%arg0: i32, %arg1: memref<8x16xf32, #tpu.memory_space<vmem>>, %arg2: memref<8x8xf32, #tpu.memory_space<vmem>>, %arg3: memref<16x1024xbf16, #tpu.memory_space<vmem>>, %arg4: memref<8x1024xbf16, #tpu.memory_space<vmem>>, %arg5: memref<1x1024xf32, #tpu.memory_space<vmem>>, %arg6: memref<1024x512xbf16, #tpu.memory_space<vmem>>, %arg7: memref<1x512xf32, #tpu.memory_space<vmem>>, %arg8: memref<1x512xf32, #tpu.memory_space<vmem>>, %arg9: memref<1xf32, #tpu.memory_space<smem>>, %arg10: memref<8x1xf32, #tpu.memory_space<vmem>>) attributes {dimension_semantics = [#tpu.dimension_semantics<parallel>], iteration_bounds = array<i64: 1>, scalar_prefetch = 0 : i64, scratch_operands = 0 : i64, tpu.core_type = #tpu.core_type<tc>, window_params = [{transform_indices = @transform_0, window_bounds = array<i64: 8, 16>}, {transform_indices = @transform_1, window_bounds = array<i64: 8, 8>}, {pipeline_mode = #tpu.pipeline_mode<synchronous>, transform_indices = @transform_2, window_bounds = array<i64: 16, 1024>}, {pipeline_mode = #tpu.pipeline_mode<synchronous>, transform_indices = @transform_3, window_bounds = array<i64: 8, 1024>}, {pipeline_mode = #tpu.pipeline_mode<synchronous>, transform_indices = @transform_4, window_bounds = array<i64: 1, 1024>}, {pipeline_mode = #tpu.pipeline_mode<synchronous>, transform_indices = @transform_5, window_bounds = array<i64: 1024, 512>}, {pipeline_mode = #tpu.pipeline_mode<synchronous>, transform_indices = @transform_6, window_bounds = array<i64: 1, 512>}, {pipeline_mode = #tpu.pipeline_mode<synchronous>, transform_indices = @transform_7, window_bounds = array<i64: 1, 512>}, {transform_indices = @transform_8, window_bounds = array<i64: 1>}, {transform_indices = @transform_9, window_bounds = array<i64: 8, 1>}]} {
    %c0 = arith.constant 0 : index
    %c0_0 = arith.constant 0 : index
    %0 = vector.load %arg1[%c0, %c0_0] : memref<8x16xf32, #tpu.memory_space<vmem>>, vector<8x16xf32>
    %1 = arith.truncf %0 : vector<8x16xf32> to vector<8x16xbf16>
    %c0_1 = arith.constant 0 : index
    %c0_2 = arith.constant 0 : index
    %2 = vector.load %arg2[%c0_1, %c0_2] : memref<8x8xf32, #tpu.memory_space<vmem>>, vector<8x8xf32>
    %3 = arith.truncf %2 : vector<8x8xf32> to vector<8x8xbf16>
    %c0_3 = arith.constant 0 : index
    %c0_4 = arith.constant 0 : index
    %4 = vector.load %arg3[%c0_3, %c0_4] : memref<16x1024xbf16, #tpu.memory_space<vmem>>, vector<16x1024xbf16>
    %cst = arith.constant dense<0.000000e+00> : vector<8x1024xf32>
    %5 = tpu.matmul %1, %4, %cst {dimension_numbers = #tpu.dot_dimension_numbers<[1], [0], [0], [1], [0, 0, 1, 1], [], []>} : vector<8x16xbf16>, vector<16x1024xbf16>, vector<8x1024xf32> -> vector<8x1024xf32>
    %c0_5 = arith.constant 0 : index
    %c0_6 = arith.constant 0 : index
    %6 = vector.load %arg4[%c0_5, %c0_6] : memref<8x1024xbf16, #tpu.memory_space<vmem>>, vector<8x1024xbf16>
    %cst_7 = arith.constant dense<0.000000e+00> : vector<8x1024xf32>
    %7 = tpu.matmul %3, %6, %cst_7 {dimension_numbers = #tpu.dot_dimension_numbers<[1], [0], [0], [1], [0, 0, 1, 1], [], []>} : vector<8x8xbf16>, vector<8x1024xbf16>, vector<8x1024xf32> -> vector<8x1024xf32>
    %8 = arith.addf %5, %7 : vector<8x1024xf32>
    %c0_8 = arith.constant 0 : index
    %c0_9 = arith.constant 0 : index
    %9 = vector.load %arg5[%c0_8, %c0_9] : memref<1x1024xf32, #tpu.memory_space<vmem>>, vector<1x1024xf32>
    %10 = vector.broadcast %9 : vector<1x1024xf32> to vector<8x1024xf32>
    %11 = arith.addf %8, %10 : vector<8x1024xf32>
    %cst_10 = arith.constant 0.000000e+00 : f32
    %12 = vector.broadcast %cst_10 : f32 to vector<8x1024xf32>
    %13 = arith.maximumf %11, %12 : vector<8x1024xf32>
    %14 = arith.truncf %13 : vector<8x1024xf32> to vector<8x1024xbf16>
    %c0_11 = arith.constant 0 : index
    %c0_12 = arith.constant 0 : index
    %15 = vector.load %arg6[%c0_11, %c0_12] : memref<1024x512xbf16, #tpu.memory_space<vmem>>, vector<1024x512xbf16>
    %cst_13 = arith.constant dense<0.000000e+00> : vector<8x512xf32>
    %16 = tpu.matmul %14, %15, %cst_13 {dimension_numbers = #tpu.dot_dimension_numbers<[1], [0], [0], [1], [0, 0, 1, 1], [], []>} : vector<8x1024xbf16>, vector<1024x512xbf16>, vector<8x512xf32> -> vector<8x512xf32>
    %c0_14 = arith.constant 0 : index
    %c0_15 = arith.constant 0 : index
    %17 = vector.load %arg7[%c0_14, %c0_15] : memref<1x512xf32, #tpu.memory_space<vmem>>, vector<1x512xf32>
    %18 = vector.broadcast %17 : vector<1x512xf32> to vector<8x512xf32>
    %19 = arith.addf %16, %18 : vector<8x512xf32>
    %cst_16 = arith.constant 0.000000e+00 : f32
    %20 = vector.broadcast %cst_16 : f32 to vector<8x512xf32>
    %21 = arith.maximumf %19, %20 : vector<8x512xf32>
    %c0_17 = arith.constant 0 : index
    %c0_18 = arith.constant 0 : index
    %22 = vector.load %arg8[%c0_17, %c0_18] : memref<1x512xf32, #tpu.memory_space<vmem>>, vector<1x512xf32>
    %23 = vector.broadcast %22 : vector<1x512xf32> to vector<8x512xf32>
    %24 = arith.mulf %21, %23 : vector<8x512xf32>
    %cst_19 = arith.constant dense<0.000000e+00> : vector<8xf32>
    %25 = vector.multi_reduction <add>, %24, %cst_19 [1] : vector<8x512xf32> to vector<8xf32>
    %26 = vector.shape_cast %25 : vector<8xf32> to vector<8x1xf32>
    %c0_20 = arith.constant 0 : index
    %27 = memref.load %arg9[%c0_20] : memref<1xf32, #tpu.memory_space<smem>>
    %28 = vector.broadcast %27 : f32 to vector<8x1xf32>
    %29 = arith.addf %26, %28 : vector<8x1xf32>
    %c0_21 = arith.constant 0 : index
    %c0_22 = arith.constant 0 : index
    %30 = vector.load %arg10[%c0_21, %c0_22] : memref<8x1xf32, #tpu.memory_space<vmem>>, vector<8x1xf32>
    tpu.vector_store %arg10[%c0_21, %c0_22], %29 {strides = array<i32>} : memref<8x1xf32, #tpu.memory_space<vmem>>, vector<8x1xf32>,
    return
  }
  func.func @transform_0(%arg0: i32) -> (i32, i32) {
    %c0_i32 = arith.constant 0 : i32
    %c0_i32_0 = arith.constant 0 : i32
    return %arg0, %c0_i32 : i32, i32
  }
  func.func @transform_1(%arg0: i32) -> (i32, i32) {
    %c0_i32 = arith.constant 0 : i32
    %c0_i32_0 = arith.constant 0 : i32
    return %arg0, %c0_i32 : i32, i32
  }
  func.func @transform_2(%arg0: i32) -> (i32, i32) {
    %c0_i32 = arith.constant 0 : i32
    %c0_i32_0 = arith.constant 0 : i32
    %c0_i32_1 = arith.constant 0 : i32
    return %c0_i32, %c0_i32_0 : i32, i32
  }
  func.func @transform_3(%arg0: i32) -> (i32, i32) {
    %c0_i32 = arith.constant 0 : i32
    %c0_i32_0 = arith.constant 0 : i32
    %c0_i32_1 = arith.constant 0 : i32
    return %c0_i32, %c0_i32_0 : i32, i32
  }
  func.func @transform_4(%arg0: i32) -> (i32, i32) {
    %c0_i32 = arith.constant 0 : i32
    %c0_i32_0 = arith.constant 0 : i32
    %c0_i32_1 = arith.constant 0 : i32
    return %c0_i32, %c0_i32_0 : i32, i32
  }
  func.func @transform_5(%arg0: i32) -> (i32, i32) {
    %c0_i32 = arith.constant 0 : i32
    %c0_i32_0 = arith.constant 0 : i32
    %c0_i32_1 = arith.constant 0 : i32
    return %c0_i32, %c0_i32_0 : i32, i32
  }
  func.func @transform_6(%arg0: i32) -> (i32, i32) {
    %c0_i32 = arith.constant 0 : i32
    %c0_i32_0 = arith.constant 0 : i32
    %c0_i32_1 = arith.constant 0 : i32
    return %c0_i32, %c0_i32_0 : i32, i32
  }
  func.func @transform_7(%arg0: i32) -> (i32, i32) {
    %c0_i32 = arith.constant 0 : i32
    %c0_i32_0 = arith.constant 0 : i32
    %c0_i32_1 = arith.constant 0 : i32
    return %c0_i32, %c0_i32_0 : i32, i32
  }
  func.func @transform_8(%arg0: i32) -> i32 {
    %c0_i32 = arith.constant 0 : i32
    %c0_i32_0 = arith.constant 0 : i32
    return %c0_i32 : i32
  }
  func.func @transform_9(%arg0: i32) -> (i32, i32) {
    %c0_i32 = arith.constant 0 : i32
    %c0_i32_0 = arith.constant 0 : i32
    return %arg0, %c0_i32 : i32, i32
  }
}

</mosaic_0001>

<bundles_post_ra>
// kernel: tpu_custom_call.1
= control target key start
LH: loop header
LB: loop body
LE: loop exit
PB: predicated region body
PF: predicated region fallthrough
CT: control target
= control target key end

     0   :  { %15 = vsyncpa [#allocation4], 0  ;;  %s4206_s0 = inlined_call_operand.hbm [shape: f32[8,16], index: 0, kind: input, shape index: {}]   ;;  %s4207_s1 = inlined_call_operand.hbm [shape: f32[8,8], index: 1, kind: input, shape index: {}]   ;;  %s4208_s2 = inlined_call_operand.hbm [shape: bf16[16,1024], index: 2, kind: input, shape index: {}]   ;;  %s4209_s3 = inlined_call_operand.hbm [shape: bf16[8,1024], index: 3, kind: input, shape index: {}]   ;;  %s4210_s4 = inlined_call_operand.hbm [shape: f32[1,1024], index: 4, kind: input, shape index: {}]   ;;  %s4211_s5 = inlined_call_operand.hbm [shape: bf16[1024,512], index: 5, kind: input, shape index: {}]   ;;  %s4212_s6 = inlined_call_operand.vmem [shape: f32[1,512], index: 6, kind: input, shape index: {}]   ;;  %s4213_s7 = inlined_call_operand.vmem [shape: f32[1,512], index: 7, kind: input, shape index: {}]   ;;  %s4214_s8 = inlined_call_operand.<no memory space> [shape: f32[1], index: 8, kind: input, shape index: {}]   ;;  %s4215_s9 = inlined_call_operand.vmem [shape: f32[8,1], index: 9, kind: output, shape index: {}]  }
   0x1   :  { %16 = vsyncpa [#allocation6], 0 }
   0x2   :  { %17 = vsyncpa [#allocation9], 0  ;;  %s35_s11 = sshll.u32 %s4207_s1, 4  ;;  %s36_s11 = int_to_ptr.hbm [resolvable:$true] %s35_s11 }
   0x3   :  { %18 = vsyncpa [#allocation12], 0  ;;  %s3975_s12 = smov [#allocation5]   ;;  %s59_s16 = sshll.u32 %s4209_s3, 4  ;;  %s60_s16 = int_to_ptr.hbm [resolvable:$true] %s59_s16 }
   0x4   :  { %s37_s13 = sshll.u32 %s3975_s12, 4  ;;  %s3976_s17 = smov [#allocation8]   ;;  %s38_s13 = int_to_ptr.vmem [resolvable:$true] %s37_s13 }
   0x5   :  { %40 = dma.hbm_to_vmem [thread:$0]  %s36_s11, 128, %s38_s13, [#allocation6]  }
   0x6   :  { %s61_s18 = sshll.u32 %s3976_s17, 4  ;;  %s24_s21 = sshll.u32 %s4206_s0, 4  ;;  %s62_s18 = int_to_ptr.vmem [resolvable:$true] %s61_s18  ;;  %s25_s21 = int_to_ptr.hbm [resolvable:$true] %s24_s21 }
   0x7   :  { %64 = dma.hbm_to_vmem [thread:$0]  %s60_s16, 512, %s62_s18, [#allocation9]  }
   0x8   :  { %s45_s23 = sshll.u32 %s4208_s2, 4  ;;  %s3977_s24 = smov [#allocation3]   ;;  %s46_s23 = int_to_ptr.hbm [resolvable:$true] %s45_s23 }
   0x9   :  { %s26_s25 = sshll.u32 %s3977_s24, 4  ;;  %s3978_s3 = smov [#allocation7]   ;;  %s27_s25 = int_to_ptr.vmem [resolvable:$true] %s26_s25 }
   0xa   :  { %29 = dma.hbm_to_vmem [thread:$0]  %s25_s21, 128, %s27_s25, [#allocation4]  }
   0xb   :  { %s47_s26 = sshll.u32 %s3978_s3, 4  ;;  %s3979_s27 = smov 512   ;;  %s48_s26 = int_to_ptr.vmem [resolvable:$true] %s47_s26 }
   0xc   :  { %s3980_s28 = smov 32   ;;  %s70_s30 = sshll.u32 %s4210_s4, 4  ;;  %s71_s30 = int_to_ptr.hbm [resolvable:$true] %s70_s30 }
   0xd   :  { %53 = dma.hbm_to_vmem [thread:$0]  %s46_s23, 1024, %s48_s26, [#allocation6], %s3979_s27, %s3979_s27, %s3980_s28  }
   0xe   :  { %s3981_s10 = smov [#allocation10]   ;;  %s80_s13 = sshll.u32 %s4211_s5, 4  ;;  %s81_s13 = int_to_ptr.hbm [resolvable:$true] %s80_s13 }
   0xf   :  { %s72_s11 = sshll.u32 %s3981_s10, 4  ;;  %s3982_s14 = smov [#allocation11]   ;;  %s73_s11 = int_to_ptr.vmem [resolvable:$true] %s72_s11 }
  0x10   :  { %75 = dma.hbm_to_vmem [thread:$0]  %s71_s30, 128, %s73_s11, [#allocation9]  }
  0x11   :  { %s82_s15 = sshll.u32 %s3982_s14, 4  ;;  %s3983_s16 = smov 256   ;;  %s83_s15 = int_to_ptr.vmem [resolvable:$true] %s82_s15 }
  0x12   :  { %s3984_s17 = smov 16  }
  0x13   :  { %88 = dma.hbm_to_vmem [thread:$0]  %s81_s13, 32768, %s83_s15, [#allocation12], %s3983_s16, %s3983_s16, %s3984_s17  }
  0x14   :  { %3967 = dma.done.wait [#allocation4], 128  }
  0x15   :  { %3968 = vsyncadd [#allocation4], 4294967168 }
  0x16   :  { %3969 = dma.done.wait [#allocation6], 1152  }
  0x17   :  { %3970 = vsyncadd [#allocation6], 4294966144 }
  0x18   :  { %3971 = dma.done.wait [#allocation9], 640  }
  0x19   :  { %3972 = vsyncadd [#allocation9], 4294966656 }
  0x1a   :  { %3973 = dma.done.wait [#allocation12], 32768  }
  0x1b   :  { %3974 = vsyncadd [#allocation12], 4294934528  ;;  %v132_v0 = vld [vmem:[#allocation8] sm:$0xff]  ;;  %vm160_vm0 = vcmask 1043456   ;;  %v133_v1 = vld [vmem:[#allocation8 + $0x8] sm:$0xff]  ;;  %vm156_vm1 = vcmask 64512  }
  0x1c   :  { %v122_v2 = vld [vmem:[#allocation5] sm:$0xff]  ;;  %v140_v3 = vunpack.c.l.b16 %v132_v0  ;;  %v141_v4 = vunpack.c.h.b16 %v132_v0  ;;  %v142_v5 = vunpack.c.l.b16 %v133_v1  ;;  %v143_v6 = vunpack.c.h.b16 %v133_v1  ;;  %v134_v7 = vld [vmem:[#allocation8 + $0x10] sm:$0xff]  ;;  %v2487_v17 = vld [vmem:[#allocation7] sm:$0xf] }
  0x1d   :  { %v135_v8 = vld [vmem:[#allocation8 + $0x18] sm:$0xff]  ;;  %v4053_v9 = vpack.c.bf16 %v122_v2, %v122_v2  ;;  %v144_v10 = vunpack.c.l.b16 %v134_v7  ;;  %v145_v11 = vunpack.c.h.b16 %v134_v7  ;;  %v3553_v18 = vld [vmem:[#allocation7 + $0x1c] sm:$0xf0]  ;;  %v3549_v23 = vld [vmem:[#allocation7 + $0x4] sm:$0xf]  ;;  %vm329_vm2 = vcmask 130048  }
  0x1e   :  { %v146_v12 = vunpack.c.l.b16 %v135_v8  ;;  %v148_v13 = vpack.c.b16 %v140_v3, %v140_v3  ;;  %v149_v14 = vpack.c.b16 %v141_v4, %v141_v4  ;;  %v150_v15 = vpack.c.b16 %v142_v5, %v142_v5  ;;  %v2489_v24 = vld [vmem:[#allocation7 + $0x20] sm:$0xf0]  ;;  %v2495_v25 = vld [vmem:[#allocation7 + $0x8] sm:$0xf]  ;;  %v3550_v34 = vld [vmem:[#allocation7 + $0xc] sm:$0xf] }
  0x1f   :  { %v151_v16 = vpack.c.b16 %v143_v6, %v143_v6  ;;  %v152_v19 = vpack.c.b16 %v144_v10, %v144_v10  ;;  %v153_v20 = vpack.c.b16 %v145_v11, %v145_v11  ;;  %v147_v22 = vunpack.c.h.b16 %v135_v8  ;;  %v3554_v30 = vld [vmem:[#allocation7 + $0x24] sm:$0xf0]  ;;  %v2497_v35 = vld [vmem:[#allocation7 + $0x28] sm:$0xf0]  ;;  %v2503_v42 = vld [vmem:[#allocation7 + $0x10] sm:$0xf] }
  0x20   :  { %v154_v21 = vpack.c.b16 %v146_v12, %v146_v12  ;;  %v162_v26 = vsel %vm160_vm0, %v148_v13, 0  ;;  %v165_v27 = vsel %vm160_vm0, %v149_v14, 0  ;;  %v168_v28 = vsel %vm160_vm0, %v150_v15, 0  ;;  %v3555_v43 = vld [vmem:[#allocation7 + $0x2c] sm:$0xf0] }
  0x21   :  { %v171_v29 = vsel %vm160_vm0, %v151_v16, 0  ;;  %192 = vmatpush.bf16.msra.mxu0 %v162_v26  ;;  %205 = vmatpush.bf16.msra.mxu1 %v165_v27  ;;  %v174_v31 = vsel %vm160_vm0, %v152_v19, 0  ;;  %v177_v32 = vsel %vm160_vm0, %v153_v20, 0  ;;  %v155_v33 = vpack.c.b16 %v147_v22, %v147_v22  ;;  %v3551_v44 = vld [vmem:[#allocation7 + $0x14] sm:$0xf] }
  0x22   :  { %218 = vmatpush.bf16.msra.mxu2 %v168_v28  ;;  %231 = vmatpush.bf16.msra.mxu3 %v171_v29  ;;  %v180_v36 = vsel %vm160_vm0, %v154_v21, 0  ;;  %v2488_v38 = vor.u32 %v3553_v18, %v2487_v17  ;;  %v2492_v39 = vor.u32 %v3549_v23, %v2489_v24  ;;  %v2496_v40 = vor.u32 %v3554_v30, %v2495_v25  ;;  %v2505_v45 = vld [vmem:[#allocation7 + $0x30] sm:$0xf0]  ;;  %v2511_v46 = vld [vmem:[#allocation7 + $0x18] sm:$0xf] }
  0x23   :  { %v183_v37 = vsel %vm160_vm0, %v155_v33, 0  ;;  %v2500_v41 = vor.u32 %v3550_v34, %v2497_v35  ;;  %v3556_v47 = vld [vmem:[#allocation7 + $0x34] sm:$0xf0]  ;;  %v3552_v48 = vld [vmem:[#allocation7 + $0x1c] sm:$0xf]  ;;  %v2504_v50 = vor.u32 %v3555_v43, %v2503_v42  ;;  %v2508_v51 = vor.u32 %v3551_v44, %v2505_v45  ;;  %v120_v54 = vld [vmem:[#allocation3] sm:$0xff] }
  0x24   :  { %2477 = vmatmul.msk.bf16.vlgmr.msra.gmra.mxu0 %vm156_vm1, %v4053_v9  ;;  %2478 = vmatmul.msk.bf16.vlgmr.msra.gmra.mxu1 %vm156_vm1, %v4053_v9  ;;  %v2513_v49 = vld [vmem:[#allocation7 + $0x38] sm:$0xf0]  ;;  %v2512_v52 = vor.u32 %v3556_v47, %v2511_v46  ;;  %v2639_v55 = vld [vmem:[#allocation11 + $0xe0] sm:$0xf]  ;;  %v3587_v56 = vld [vmem:[#allocation11 + $0xec] sm:$0xf0]  ;;  %v4079_v60 = vpack.c.bf16 %v120_v54, %v120_v54 }
  0x25   :  { %244 = vmatpush.bf16.msrb.mxu0 %v174_v31  ;;  %257 = vmatpush.bf16.msrb.mxu1 %v177_v32  ;;  %v2516_v53 = vor.u32 %v3552_v48, %v2513_v49  ;;  %v2767_v57 = vld [vmem:[#allocation11 + $0x1e0] sm:$0xf]  ;;  %v3619_v58 = vld [vmem:[#allocation11 + $0x1ec] sm:$0xf0]  ;;  %v2640_v0 = vor.u32 %v3587_v56, %v2639_v55  ;;  %vm2467_vm3 = vcmask 7168  }
  0x26   :  { %2479 = vmatmul.msk.bf16.vlgmr.msra.gmra.mxu2 %vm156_vm1, %v4053_v9  ;;  %2480 = vmatmul.msk.bf16.vlgmr.msra.gmra.mxu3 %vm156_vm1, %v4053_v9  ;;  %v2895_v59 = vld [vmem:[#allocation11 + $0x2e0] sm:$0xf]  ;;  %v3651_v61 = vld [vmem:[#allocation11 + $0x2ec] sm:$0xf0]  ;;  %v2768_v1 = vor.u32 %v3619_v58, %v2767_v57 }
  0x27   :  { %270 = vmatpush.bf16.msrb.mxu2 %v180_v36  ;;  %283 = vmatpush.bf16.msrb.mxu3 %v183_v37  ;;  %v3023_v62 = vld [vmem:[#allocation11 + $0x3e0] sm:$0xf]  ;;  %v3683_v63 = vld [vmem:[#allocation11 + $0x3ec] sm:$0xf0]  ;;  %v2896_v6 = vor.u32 %v3651_v61, %v2895_v59 }
  0x28   :  { %v2623_v2 = vld [vmem:[#allocation11 + $0xc0] sm:$0xf]  ;;  %v3583_v3 = vld [vmem:[#allocation11 + $0xcc] sm:$0xf0]  ;;  %v3024_v7 = vor.u32 %v3683_v63, %v3023_v62 }
  0x29   :  { %340 = vmatpush.bf16.msra.mxu0 %v2488_v38  ;;  %353 = vmatpush.bf16.msra.mxu1 %v2492_v39  ;;  %v2751_v4 = vld [vmem:[#allocation11 + $0x1c0] sm:$0xf]  ;;  %v3615_v5 = vld [vmem:[#allocation11 + $0x1cc] sm:$0xf0]  ;;  %v2624_v12 = vor.u32 %v3583_v3, %v2623_v2 }
  0x2a   :  { %v2879_v8 = vld [vmem:[#allocation11 + $0x2c0] sm:$0xf]  ;;  %v3679_v11 = vld [vmem:[#allocation11 + $0x3cc] sm:$0xf0]  ;;  %v2752_v13 = vor.u32 %v3615_v5, %v2751_v4 }
  0x2b   :  { %366 = vmatpush.bf16.msra.mxu2 %v2496_v40  ;;  %379 = vmatpush.bf16.msra.mxu3 %v2500_v41  ;;  %v3007_v10 = vld [vmem:[#allocation11 + $0x3c0] sm:$0xf]  ;;  %v3579_v15 = vld [vmem:[#allocation11 + $0xac] sm:$0xf0] }
  0x2c   :  { %v2607_v14 = vld [vmem:[#allocation11 + $0xa0] sm:$0xf]  ;;  %v3611_v17 = vld [vmem:[#allocation11 + $0x1ac] sm:$0xf0]  ;;  %v3008_v19 = vor.u32 %v3679_v11, %v3007_v10 }
  0x2d   :  { %v2735_v16 = vld [vmem:[#allocation11 + $0x1a0] sm:$0xf]  ;;  %v3643_v21 = vld [vmem:[#allocation11 + $0x2ac] sm:$0xf0]  ;;  %v2608_v24 = vor.u32 %v3579_v15, %v2607_v14 }
  0x2e   :  { %v2863_v20 = vld [vmem:[#allocation11 + $0x2a0] sm:$0xf]  ;;  %v3675_v23 = vld [vmem:[#allocation11 + $0x3ac] sm:$0xf0]  ;;  %v2736_v25 = vor.u32 %v3611_v17, %v2735_v16 }
  0x2f   :  { %v2991_v22 = vld [vmem:[#allocation11 + $0x3a0] sm:$0xf]  ;;  %v3575_v27 = vld [vmem:[#allocation11 + $0x8c] sm:$0xf0]  ;;  %v2864_v30 = vor.u32 %v3643_v21, %v2863_v20 }
  0x30   :  { %v2591_v26 = vld [vmem:[#allocation11 + $0x80] sm:$0xf]  ;;  %v3607_v29 = vld [vmem:[#allocation11 + $0x18c] sm:$0xf0]  ;;  %v2992_v31 = vor.u32 %v3675_v23, %v2991_v22 }
  0x31   :  { %v2719_v28 = vld [vmem:[#allocation11 + $0x180] sm:$0xf]  ;;  %v2592_v32 = vor.u32 %v3575_v27, %v2591_v26  ;;  %v3571_v35 = vld [vmem:[#allocation11 + $0x6c] sm:$0xf0] }
  0x32   :  { %v2720_v33 = vor.u32 %v3607_v29, %v2719_v28  ;;  %v2575_v34 = vld [vmem:[#allocation11 + $0x60] sm:$0xf]  ;;  %v3603_v37 = vld [vmem:[#allocation11 + $0x16c] sm:$0xf0] }
  0x33   :  { %v2703_v36 = vld [vmem:[#allocation11 + $0x160] sm:$0xf]  ;;  %v2576_v38 = vor.u32 %v3571_v35, %v2575_v34  ;;  %v3639_v41 = vld [vmem:[#allocation11 + $0x28c] sm:$0xf0] }
  0x34   :  { %2481 = vmatmul.msk.bf16.vlgmr.msrb.gmra.mxu0 %vm156_vm1, %v4053_v9  ;;  %2482 = vmatmul.msk.bf16.vlgmr.msrb.gmra.mxu1 %vm156_vm1, %v4053_v9  ;;  %v2704_v39 = vor.u32 %v3603_v37, %v2703_v36  ;;  %v2847_v40 = vld [vmem:[#allocation11 + $0x280] sm:$0xf]  ;;  %v3671_v44 = vld [vmem:[#allocation11 + $0x38c] sm:$0xf0] }
  0x35   :  { %392 = vmatpush.bf16.msrb.mxu0 %v2504_v50  ;;  %405 = vmatpush.bf16.msrb.mxu1 %v2508_v51  ;;  %v2975_v42 = vld [vmem:[#allocation11 + $0x380] sm:$0xf]  ;;  %v2848_v43 = vor.u32 %v3639_v41, %v2847_v40  ;;  %v3567_v46 = vld [vmem:[#allocation11 + $0x4c] sm:$0xf0] }
  0x36   :  { %2483 = vmatmul.msk.bf16.vlgmr.msrb.gmra.mxu2 %vm156_vm1, %v4053_v9  ;;  %2484 = vmatmul.msk.bf16.vlgmr.msrb.gmra.mxu3 %vm156_vm1, %v4053_v9  ;;  %v3647_v9 = vld [vmem:[#allocation11 + $0x2cc] sm:$0xf0]  ;;  %v2559_v45 = vld [vmem:[#allocation11 + $0x40] sm:$0xf]  ;;  %v2976_v47 = vor.u32 %v3671_v44, %v2975_v42 }
  0x37   :  { %418 = vmatpush.bf16.msrb.mxu2 %v2512_v52  ;;  %431 = vmatpush.bf16.msrb.mxu3 %v2516_v53  ;;  %v2880_v18 = vor.u32 %v3647_v9, %v2879_v8  ;;  %v2560_v48 = vor.u32 %v3567_v46, %v2559_v45  ;;  %v2687_v49 = vld [vmem:[#allocation11 + $0x140] sm:$0xf]  ;;  %v3599_v50 = vld [vmem:[#allocation11 + $0x14c] sm:$0xf0] }
  0x38   :  { %v2831_v51 = vld [vmem:[#allocation11 + $0x260] sm:$0xf]  ;;  %v2688_v52 = vor.u32 %v3599_v50, %v2687_v49  ;;  %v3635_v53 = vld [vmem:[#allocation11 + $0x26c] sm:$0xf0] }
  0x39   :  { %v2959_v54 = vld [vmem:[#allocation11 + $0x360] sm:$0xf]  ;;  %v3667_v55 = vld [vmem:[#allocation11 + $0x36c] sm:$0xf0]  ;;  %v2832_v56 = vor.u32 %v3635_v53, %v2831_v51 }
  0x3a   :  { %v2960_v57 = vor.u32 %v3667_v55, %v2959_v54  ;;  %v2543_v58 = vld [vmem:[#allocation11 + $0x20] sm:$0xf]  ;;  %v3563_v59 = vld [vmem:[#allocation11 + $0x2c] sm:$0xf0] }
  0x3b   :  { %v2544_v61 = vor.u32 %v3563_v59, %v2543_v58  ;;  %v3595_v62 = vld [vmem:[#allocation11 + $0x12c] sm:$0xf0]  ;;  %v2943_v2 = vld [vmem:[#allocation11 + $0x340] sm:$0xf] }
  0x3c   :  { %v3663_v4 = vld [vmem:[#allocation11 + $0x34c] sm:$0xf0]  ;;  %v2527_v5 = vld [vmem:[#allocation11] sm:$0xf] }
  0x3d   :  { %v2655_v9 = vld [vmem:[#allocation11 + $0x100] sm:$0xf]  ;;  %v3591_v10 = vld [vmem:[#allocation11 + $0x10c] sm:$0xf0] }
  0x3e   :  { %v3151_v11 = vld [vmem:[#allocation11 + $0x4e0] sm:$0xf]  ;;  %v3747_v15 = vld [vmem:[#allocation11 + $0x5ec] sm:$0xf0] }
  0x3f   :  { %v3279_v14 = vld [vmem:[#allocation11 + $0x5e0] sm:$0xf]  ;;  %v3659_v22 = vld [vmem:[#allocation11 + $0x32c] sm:$0xf0] }
  0x40   :  { %v3280_v17 = vor.u32 %v3747_v15, %v3279_v14  ;;  %v2927_v20 = vld [vmem:[#allocation11 + $0x320] sm:$0xf]  ;;  %v3743_v28 = vld [vmem:[#allocation11 + $0x5cc] sm:$0xf0] }
  0x41   :  { %v2928_v23 = vor.u32 %v3659_v22, %v2927_v20  ;;  %v3263_v26 = vld [vmem:[#allocation11 + $0x5c0] sm:$0xf]  ;;  %v3655_v34 = vld [vmem:[#allocation11 + $0x30c] sm:$0xf0] }
  0x42   :  { %v2783_v29 = vld [vmem:[#allocation11 + $0x200] sm:$0xf]  ;;  %v3779_v37 = vld [vmem:[#allocation11 + $0x6ec] sm:$0xf0] }
  0x43   :  { %v3407_v35 = vld [vmem:[#allocation11 + $0x6e0] sm:$0xf]  ;;  %v3739_v46 = vld [vmem:[#allocation11 + $0x5ac] sm:$0xf0] }
  0x44   :  { %2517 = vmatmul.msk.bf16.vlgmr.msra.gmra.mxu0 %vm329_vm2, %v4079_v60  ;;  %2518 = vmatmul.msk.bf16.vlgmr.msra.gmra.mxu1 %vm329_vm2, %v4079_v60  ;;  %v3408_v40 = vor.u32 %v3779_v37, %v3407_v35  ;;  %v3119_v42 = vld [vmem:[#allocation11 + $0x4a0] sm:$0xf]  ;;  %v3775_v49 = vld [vmem:[#allocation11 + $0x6cc] sm:$0xf0] }
  0x45   :  { %2025 = vmatpush.bf16.msra.mxu0 %v2640_v0  ;;  %2038 = vmatpush.bf16.msra.mxu1 %v2768_v1  ;;  %v2815_v0 = vld [vmem:[#allocation11 + $0x240] sm:$0xf]  ;;  %v3631_v1 = vld [vmem:[#allocation11 + $0x24c] sm:$0xf0] }
  0x46   :  { %2519 = vmatmul.msk.bf16.vlgmr.msra.gmra.mxu2 %vm329_vm2, %v4079_v60  ;;  %2520 = vmatmul.msk.bf16.vlgmr.msra.gmra.mxu3 %vm329_vm2, %v4079_v60  ;;  %v2816_v3 = vor.u32 %v3631_v1, %v2815_v0  ;;  %v3247_v44 = vld [vmem:[#allocation11 + $0x5a0] sm:$0xf]  ;;  %v3703_v55 = vld [vmem:[#allocation11 + $0x48c] sm:$0xf0] }
  0x47   :  { %2051 = vmatpush.bf16.msra.mxu2 %v2896_v6  ;;  %2064 = vmatpush.bf16.msra.mxu3 %v3024_v7  ;;  %v3559_v6 = vld [vmem:[#allocation11 + $0xc] sm:$0xf0]  ;;  %v2944_v7 = vor.u32 %v3663_v4, %v2943_v2  ;;  %v3519_v50 = vld [vmem:[#allocation11 + $0x7c0] sm:$0xf] }
  0x48   :  { %v2528_v8 = vor.u32 %v3559_v6, %v2527_v5  ;;  %v3103_v54 = vld [vmem:[#allocation11 + $0x480] sm:$0xf]  ;;  %v3735_v58 = vld [vmem:[#allocation11 + $0x58c] sm:$0xf0] }
  0x49   :  { %2026 = vmatpush.bf16.msra.mxu0 %v2624_v12  ;;  %2039 = vmatpush.bf16.msra.mxu1 %v2752_v13  ;;  %v2656_v12 = vor.u32 %v3591_v10, %v2655_v9  ;;  %v3715_v13 = vld [vmem:[#allocation11 + $0x4ec] sm:$0xf0]  ;;  %v3087_v1 = vld [vmem:[#allocation11 + $0x460] sm:$0xf] }
  0x4a   :  { %v3152_v16 = vor.u32 %v3715_v13, %v3151_v11  ;;  %v3803_v0 = vld [vmem:[#allocation11 + $0x7ac] sm:$0xf0]  ;;  %v3215_v5 = vld [vmem:[#allocation11 + $0x560] sm:$0xf] }
  0x4b   :  { %2052 = vmatpush.bf16.msra.mxu2 %v2880_v18  ;;  %2065 = vmatpush.bf16.msra.mxu3 %v3008_v19  ;;  %v2799_v18 = vld [vmem:[#allocation11 + $0x220] sm:$0xf]  ;;  %v3627_v19 = vld [vmem:[#allocation11 + $0x22c] sm:$0xf0] }
  0x4c   :  { %v2800_v21 = vor.u32 %v3627_v19, %v2799_v18  ;;  %v3699_v2 = vld [vmem:[#allocation11 + $0x46c] sm:$0xf0]  ;;  %v3487_v10 = vld [vmem:[#allocation11 + $0x780] sm:$0xf] }
  0x4d   :  { %2027 = vmatpush.bf16.msra.mxu0 %v2608_v24  ;;  %2040 = vmatpush.bf16.msra.mxu1 %v2736_v25  ;;  %v3135_v24 = vld [vmem:[#allocation11 + $0x4c0] sm:$0xf]  ;;  %v3711_v25 = vld [vmem:[#allocation11 + $0x4cc] sm:$0xf0]  ;;  %v3088_v4 = vor.u32 %v3699_v2, %v3087_v1 }
  0x4e   :  { %v3136_v27 = vor.u32 %v3711_v25, %v3135_v24  ;;  %v3731_v6 = vld [vmem:[#allocation11 + $0x56c] sm:$0xf0]  ;;  %v3071_v14 = vld [vmem:[#allocation11 + $0x440] sm:$0xf] }
  0x4f   :  { %2053 = vmatpush.bf16.msra.mxu2 %v2864_v30  ;;  %2066 = vmatpush.bf16.msra.mxu3 %v2992_v31  ;;  %v3623_v30 = vld [vmem:[#allocation11 + $0x20c] sm:$0xf0]  ;;  %v3264_v31 = vor.u32 %v3743_v28, %v3263_v26  ;;  %v3343_v22 = vld [vmem:[#allocation11 + $0x660] sm:$0xf] }
  0x50   :  { %v3767_v9 = vld [vmem:[#allocation11 + $0x68c] sm:$0xf0]  ;;  %v3471_v24 = vld [vmem:[#allocation11 + $0x760] sm:$0xf] }
  0x51   :  { %2028 = vmatpush.bf16.msra.mxu0 %v2592_v32  ;;  %2041 = vmatpush.bf16.msra.mxu1 %v2720_v33  ;;  %v2784_v32 = vor.u32 %v3623_v30, %v2783_v29  ;;  %v2911_v33 = vld [vmem:[#allocation11 + $0x300] sm:$0xf]  ;;  %v3695_v15 = vld [vmem:[#allocation11 + $0x44c] sm:$0xf0] }
  0x52   :  { %v2912_v36 = vor.u32 %v3655_v34, %v2911_v33  ;;  %v3727_v18 = vld [vmem:[#allocation11 + $0x54c] sm:$0xf0]  ;;  %v3055_v28 = vld [vmem:[#allocation11 + $0x420] sm:$0xf] }
  0x53   :  { %2054 = vmatpush.bf16.msra.mxu2 %v2848_v43  ;;  %2067 = vmatpush.bf16.msra.mxu3 %v2976_v47  ;;  %v3707_v43 = vld [vmem:[#allocation11 + $0x4ac] sm:$0xf0]  ;;  %v3248_v47 = vor.u32 %v3739_v46, %v3247_v44  ;;  %v3327_v34 = vld [vmem:[#allocation11 + $0x640] sm:$0xf] }
  0x54   :  { %2521 = vmatmul.msk.bf16.vlgmr.msrb.gmra.mxu0 %vm329_vm2, %v4079_v60  ;;  %2522 = vmatmul.msk.bf16.vlgmr.msrb.gmra.mxu1 %vm329_vm2, %v4079_v60  ;;  %v3120_v45 = vor.u32 %v3707_v43, %v3119_v42  ;;  %v3795_v26 = vld [vmem:[#allocation11 + $0x76c] sm:$0xf0]  ;;  %v3167_v42 = vld [vmem:[#allocation11 + $0x500] sm:$0xf] }
  0x55   :  { %2029 = vmatpush.bf16.msra.mxu0 %v2576_v38  ;;  %2042 = vmatpush.bf16.msra.mxu1 %v2704_v39  ;;  %v3535_v38 = vld [vmem:[#allocation11 + $0x7e0] sm:$0xf]  ;;  %v3811_v39 = vld [vmem:[#allocation11 + $0x7ec] sm:$0xf0] }
  0x56   :  { %2523 = vmatmul.msk.bf16.vlgmr.msrb.gmra.mxu2 %vm329_vm2, %v4079_v60  ;;  %2524 = vmatmul.msk.bf16.vlgmr.msrb.gmra.mxu3 %vm329_vm2, %v4079_v60  ;;  %v2671_v60 = vld [vmem:[#allocation11 + $0x120] sm:$0xf]  ;;  %v3536_v41 = vor.u32 %v3811_v39, %v3535_v38  ;;  %v3691_v29 = vld [vmem:[#allocation11 + $0x42c] sm:$0xf0] }
  0x57   :  { %2055 = vmatpush.bf16.msra.mxu2 %v2832_v56  ;;  %2068 = vmatpush.bf16.msra.mxu3 %v2960_v57  ;;  %v2672_v63 = vor.u32 %v3595_v62, %v2671_v60  ;;  %v3231_v56 = vld [vmem:[#allocation11 + $0x580] sm:$0xf]  ;;  %v3104_v57 = vor.u32 %v3703_v55, %v3103_v54  ;;  %v3056_v30 = vor.u32 %v3691_v29, %v3055_v28  ;;  %v3759_v35 = vld [vmem:[#allocation11 + $0x64c] sm:$0xf0]  ;;  %v3581_v29 = vld [vmem:[#allocation11 + $0xc4] sm:$0xf] }
  0x58   :  { %v3232_v59 = vor.u32 %v3735_v58, %v3231_v56  ;;  %v3375_v60 = vld [vmem:[#allocation11 + $0x6a0] sm:$0xf]  ;;  %v3328_v37 = vor.u32 %v3759_v35, %v3327_v34  ;;  %v3791_v38 = vld [vmem:[#allocation11 + $0x74c] sm:$0xf0]  ;;  %v2753_v34 = vld [vmem:[#allocation11 + $0x1d0] sm:$0xf0] }
  0x59   :  { %2030 = vmatpush.bf16.msra.mxu0 %v2560_v48  ;;  %2043 = vmatpush.bf16.msra.mxu1 %v2688_v52  ;;  %v3391_v48 = vld [vmem:[#allocation11 + $0x6c0] sm:$0xf]  ;;  %v3807_v52 = vld [vmem:[#allocation11 + $0x7cc] sm:$0xf0] }
  0x5a   :  { %v3392_v51 = vor.u32 %v3775_v49, %v3391_v48  ;;  %v3520_v53 = vor.u32 %v3807_v52, %v3519_v50  ;;  %v3503_v62 = vld [vmem:[#allocation11 + $0x7a0] sm:$0xf]  ;;  %v3719_v46 = vld [vmem:[#allocation11 + $0x50c] sm:$0xf0] }
  0x5b   :  { %2056 = vmatpush.bf16.msra.mxu2 %v2816_v3  ;;  %2069 = vmatpush.bf16.msra.mxu3 %v2944_v7  ;;  %v3504_v3 = vor.u32 %v3803_v0, %v3503_v62  ;;  %v3216_v7 = vor.u32 %v3731_v6, %v3215_v5  ;;  %v3168_v49 = vor.u32 %v3719_v46, %v3167_v42  ;;  %v3311_v50 = vld [vmem:[#allocation11 + $0x620] sm:$0xf]  ;;  %v3787_v54 = vld [vmem:[#allocation11 + $0x72c] sm:$0xf0]  ;;  %v4113_v6 = vld [vmem:[#allocation10] sm:$0xff] }
  0x5c   :  { %v3439_v52 = vld [vmem:[#allocation11 + $0x720] sm:$0xf]  ;;  %v3681_v42 = vld [vmem:[#allocation11 + $0x3e4] sm:$0xf] }
  0x5d   :  { %2031 = vmatpush.bf16.msra.mxu0 %v2544_v61  ;;  %2044 = vmatpush.bf16.msra.mxu1 %v2672_v63  ;;  %v3771_v61 = vld [vmem:[#allocation11 + $0x6ac] sm:$0xf0]  ;;  %v3440_v55 = vor.u32 %v3787_v54, %v3439_v52  ;;  %v3295_v56 = vld [vmem:[#allocation11 + $0x600] sm:$0xf] }
  0x5e   :  { %v3376_v63 = vor.u32 %v3771_v61, %v3375_v60  ;;  %v3783_v60 = vld [vmem:[#allocation11 + $0x70c] sm:$0xf0] }
  0x5f   :  { %2057 = vmatpush.bf16.msra.mxu2 %v2800_v21  ;;  %2070 = vmatpush.bf16.msra.mxu3 %v2928_v23  ;;  %v3763_v23 = vld [vmem:[#allocation11 + $0x66c] sm:$0xf0] }
  0x60   :  { %v3344_v25 = vor.u32 %v3763_v23, %v3343_v22  ;;  %v2769_v22 = vld [vmem:[#allocation11 + $0x1f0] sm:$0xf0] }
  0x61   :  { %2032 = vmatpush.bf16.msra.mxu0 %v2528_v8  ;;  %2045 = vmatpush.bf16.msra.mxu1 %v2656_v12  ;;  %v3359_v8 = vld [vmem:[#allocation11 + $0x680] sm:$0xf]  ;;  %v3799_v12 = vld [vmem:[#allocation11 + $0x78c] sm:$0xf0] }
  0x62   :  { %v3360_v11 = vor.u32 %v3767_v9, %v3359_v8  ;;  %v3488_v13 = vor.u32 %v3799_v12, %v3487_v10  ;;  %v439_v9 = vperm.slane %v4113_v6, 0  ;;  %v440_v10 = vperm.slane %v4113_v6, 1 }
  0x63   :  { %2058 = vmatpush.bf16.msra.mxu2 %v2784_v32  ;;  %2071 = vmatpush.bf16.msra.mxu3 %v2912_v36  ;;  %v3723_v32 = vld [vmem:[#allocation11 + $0x52c] sm:$0xf0]  ;;  %v3455_v36 = vld [vmem:[#allocation11 + $0x740] sm:$0xf] }
  0x64   :  { %v3456_v39 = vor.u32 %v3791_v38, %v3455_v36 }
  0x65   :  { %2077 = vmatpush.bf16.msrb.mxu0 %v3152_v16  ;;  %2090 = vmatpush.bf16.msrb.mxu1 %v3280_v17  ;;  %v3199_v16 = vld [vmem:[#allocation11 + $0x540] sm:$0xf]  ;;  %v3072_v17 = vor.u32 %v3695_v15, %v3071_v14  ;;  %v3585_v15 = vld [vmem:[#allocation11 + $0xe4] sm:$0xf] }
  0x66   :  { %v3200_v21 = vor.u32 %v3727_v18, %v3199_v16  ;;  %v2641_v18 = vld [vmem:[#allocation11 + $0xf0] sm:$0xf0] }
  0x67   :  { %2103 = vmatpush.bf16.msrb.mxu2 %v3408_v40  ;;  %2116 = vmatpush.bf16.msrb.mxu3 %v3536_v41  ;;  %v3039_v40 = vld [vmem:[#allocation11 + $0x400] sm:$0xf]  ;;  %v3687_v41 = vld [vmem:[#allocation11 + $0x40c] sm:$0xf0] }
  0x69   :  { %2078 = vmatpush.bf16.msrb.mxu0 %v3136_v27  ;;  %2091 = vmatpush.bf16.msrb.mxu1 %v3264_v31  ;;  %v3472_v27 = vor.u32 %v3795_v26, %v3471_v24  ;;  %v3183_v31 = vld [vmem:[#allocation11 + $0x520] sm:$0xf]  ;;  %v442_v26 = vperm.slane %v4113_v6, 3 }
  0x6a   :  { %v3184_v33 = vor.u32 %v3723_v32, %v3183_v31 }
  0x6b   :  { %2104 = vmatpush.bf16.msrb.mxu2 %v3392_v51  ;;  %2117 = vmatpush.bf16.msrb.mxu3 %v3520_v53  ;;  %v3755_v51 = vld [vmem:[#allocation11 + $0x62c] sm:$0xf0] }
  0x6c   :  { %v3312_v53 = vor.u32 %v3755_v51, %v3311_v50  ;;  %v3609_v50 = vld [vmem:[#allocation11 + $0x1a4] sm:$0xf] }
  0x6d   :  { %2079 = vmatpush.bf16.msrb.mxu0 %v3120_v45  ;;  %2092 = vmatpush.bf16.msrb.mxu1 %v3248_v47  ;;  %v3040_v45 = vor.u32 %v3687_v41, %v3039_v40  ;;  %v3649_v40 = vld [vmem:[#allocation11 + $0x2e4] sm:$0xf]  ;;  %v2897_v41 = vld [vmem:[#allocation11 + $0x2f0] sm:$0xf0] }
  0x6e   :  { %v2900_v54 = vor.u32 %v3649_v40, %v2897_v41 }
  0x6f   :  { %2105 = vmatpush.bf16.msrb.mxu2 %v3376_v63  ;;  %2118 = vmatpush.bf16.msrb.mxu3 %v3504_v3 }
  0x71   :  { %2080 = vmatpush.bf16.msrb.mxu0 %v3104_v57  ;;  %2093 = vmatpush.bf16.msrb.mxu1 %v3232_v59  ;;  %v3751_v57 = vld [vmem:[#allocation11 + $0x60c] sm:$0xf0]  ;;  %v3423_v59 = vld [vmem:[#allocation11 + $0x700] sm:$0xf] }
  0x72   :  { %v3296_v58 = vor.u32 %v3751_v57, %v3295_v56  ;;  %v3424_v61 = vor.u32 %v3783_v60, %v3423_v59  ;;  %v3645_v57 = vld [vmem:[#allocation11 + $0x2c4] sm:$0xf] }
  0x73   :  { %2106 = vmatpush.bf16.msrb.mxu2 %v3360_v11  ;;  %2119 = vmatpush.bf16.msrb.mxu3 %v3488_v13  ;;  %v3677_v59 = vld [vmem:[#allocation11 + $0x3c4] sm:$0xf] }
  0x75   :  { %2081 = vmatpush.bf16.msrb.mxu0 %v3088_v4  ;;  %2094 = vmatpush.bf16.msrb.mxu1 %v3216_v7 }
  0x77   :  { %2107 = vmatpush.bf16.msrb.mxu2 %v3344_v25  ;;  %2120 = vmatpush.bf16.msrb.mxu3 %v3472_v27  ;;  %v441_v25 = vperm.slane %v4113_v6, 2  ;;  %v2644_v27 = vor.u32 %v3585_v15, %v2641_v18  ;;  %v3641_v18 = vld [vmem:[#allocation11 + $0x2a4] sm:$0xf] }
  0x79   :  { %2082 = vmatpush.bf16.msrb.mxu0 %v3072_v17  ;;  %2095 = vmatpush.bf16.msrb.mxu1 %v3200_v21  ;;  %v3617_v21 = vld [vmem:[#allocation11 + $0x1e4] sm:$0xf] }
  0x7a   :  { %v2772_v28 = vor.u32 %v3617_v21, %v2769_v22  ;;  %v2865_v21 = vld [vmem:[#allocation11 + $0x2b0] sm:$0xf0] }
  0x7b   :  { %2108 = vmatpush.bf16.msrb.mxu2 %v3328_v37  ;;  %2121 = vmatpush.bf16.msrb.mxu3 %v3456_v39 }
  0x7d   :  { %2083 = vmatpush.bf16.msrb.mxu0 %v3056_v30  ;;  %2096 = vmatpush.bf16.msrb.mxu1 %v3184_v33  ;;  %v2625_v30 = vld [vmem:[#allocation11 + $0xd0] sm:$0xf0]  ;;  %v3613_v33 = vld [vmem:[#allocation11 + $0x1c4] sm:$0xf] }
  0x7e   :  { %v2628_v39 = vor.u32 %v3581_v29, %v2625_v30  ;;  %v3569_v29 = vld [vmem:[#allocation11 + $0x64] sm:$0xf]  ;;  %v2868_v30 = vor.u32 %v3641_v18, %v2865_v21 }
  0x7f   :  { %2109 = vmatpush.bf16.msrb.mxu2 %v3312_v53  ;;  %2122 = vmatpush.bf16.msrb.mxu3 %v3440_v55  ;;  %v443_v53 = vperm.slane %v4113_v6, 4 }
  0x81   :  { %2084 = vmatpush.bf16.msrb.mxu0 %v3040_v45  ;;  %2097 = vmatpush.bf16.msrb.mxu1 %v3168_v49  ;;  %v3577_v49 = vld [vmem:[#allocation11 + $0xa4] sm:$0xf] }
  0x83   :  { %2110 = vmatpush.bf16.msrb.mxu2 %v3296_v58  ;;  %2123 = vmatpush.bf16.msrb.mxu3 %v3424_v61  ;;  %v2881_v58 = vld [vmem:[#allocation11 + $0x2d0] sm:$0xf0] }
  0xa1   :  { %v4097_v19 = vpop.f32.mrf.mxu0  ;;  %v4099_v20 = vpop.f32.mrf.mxu1 }
  0xa9   :  { %v4101_v43 = vpop.f32.mrf.mxu2  ;;  %v4103_v44 = vpop.f32.mrf.mxu3 }
  0xaa   :  { %v196_v47 = vpop.f32.mrf.mxu0  ;;  %v209_v48 = vpop.f32.mrf.mxu1 }
  0xab   :  { %v2756_v47 = vor.u32 %v3613_v33, %v2753_v34  ;;  %v3025_v48 = vld [vmem:[#allocation11 + $0x3f0] sm:$0xf0]  ;;  %v446_v34 = vperm.slane %v4113_v6, 7 }
  0xac   :  { %v3028_v55 = vor.u32 %v3681_v42, %v3025_v48  ;;  %v3565_v48 = vld [vmem:[#allocation11 + $0x44] sm:$0xf] }
  0xb1   :  { %v222_v62 = vpop.f32.mrf.mxu2  ;;  %v235_v63 = vpop.f32.mrf.mxu3 }
  0xb2   :  { %v4105_v0 = vpop.f32.mrf.mxu0  ;;  %v4107_v1 = vpop.f32.mrf.mxu1  ;;  %v444_v62 = vperm.slane %v4113_v6, 5 }
  0xb9   :  { %v4109_v2 = vpop.f32.mrf.mxu2  ;;  %v4111_v3 = vpop.f32.mrf.mxu3 }
  0xba   :  { %v248_v4 = vpop.f32.mrf.mxu0  ;;  %v261_v5 = vpop.f32.mrf.mxu1 }
  0xbb   :  { %v3009_v4 = vld [vmem:[#allocation11 + $0x3d0] sm:$0xf0]  ;;  %v3573_v5 = vld [vmem:[#allocation11 + $0x84] sm:$0xf] }
  0xc1   :  { %v274_v7 = vpop.f32.mrf.mxu2  ;;  %v287_v8 = vpop.f32.mrf.mxu3 }
  0xc2   :  { %v342_v11 = vpop.f32.mrf.mxu0  ;;  %v355_v12 = vpop.f32.mrf.mxu1 }
  0xc3   :  { %v343_v13 = vadd.f32 %v342_v11, %v4097_v19  ;;  %v356_v14 = vadd.f32 %v355_v12, %v4099_v20  ;;  %v2721_v11 = vld [vmem:[#allocation11 + $0x190] sm:$0xf0] }
  0xc5   :  { %v455_v16 = vadd.f32 %v439_v9, %v343_v13  ;;  %v456_v17 = vadd.f32 %v440_v10, %v356_v14  ;;  %v2593_v9 = vld [vmem:[#allocation11 + $0x90] sm:$0xf0]  ;;  %v3605_v10 = vld [vmem:[#allocation11 + $0x184] sm:$0xf]  ;;  %v2884_v14 = vor.u32 %v3645_v57, %v2881_v58 }
  0xc6   :  { %v2596_v22 = vor.u32 %v3573_v5, %v2593_v9  ;;  %v2833_v58 = vld [vmem:[#allocation11 + $0x270] sm:$0xf0] }
  0xc7   :  { %v463_v23 = vmax.f32 %v455_v16, 0.0  ;;  %v464_v24 = vmax.f32 %v456_v17, 0.0  ;;  %v3012_v17 = vor.u32 %v3677_v59, %v3009_v4  ;;  %v2961_v59 = vld [vmem:[#allocation11 + $0x370] sm:$0xf0] }
  0xc8   :  { %v2545_v4 = vld [vmem:[#allocation11 + $0x30] sm:$0xf0] }
  0xc9   :  { %v4121_v31 = vpack.c.bf16 %v463_v23, %v463_v23  ;;  %v4123_v19 = vpack.c.bf16 %v464_v24, %v464_v24  ;;  %v368_v20 = vpop.f32.mrf.mxu2  ;;  %v381_v32 = vpop.f32.mrf.mxu3  ;;  %v2724_v23 = vor.u32 %v3605_v10, %v2721_v11  ;;  %v3673_v24 = vld [vmem:[#allocation11 + $0x3a4] sm:$0xf]  ;;  %v2673_v9 = vld [vmem:[#allocation11 + $0x130] sm:$0xf0] }
  0xca   :  { %v369_v35 = vadd.f32 %v368_v20, %v4101_v43  ;;  %v382_v36 = vadd.f32 %v381_v32, %v4103_v44  ;;  %v344_v37 = vpop.f32.mrf.mxu0  ;;  %v357_v38 = vpop.f32.mrf.mxu1  ;;  %v2609_v43 = vld [vmem:[#allocation11 + $0xb0] sm:$0xf0]  ;;  %v3601_v32 = vld [vmem:[#allocation11 + $0x164] sm:$0xf] }
  0xcb   :  { %2033 = vmatmul.bf16.vlgmr.msra.gmra.mxu0 %v4121_v31  ;;  %2046 = vmatmul.bf16.vlgmr.msra.gmra.mxu1 %v4123_v19  ;;  %v2737_v44 = vld [vmem:[#allocation11 + $0x1b0] sm:$0xf0]  ;;  %v2612_v56 = vor.u32 %v3577_v49, %v2609_v43  ;;  %v3669_v38 = vld [vmem:[#allocation11 + $0x384] sm:$0xf] }
  0xcc   :  { %v457_v45 = vadd.f32 %v441_v25, %v369_v35  ;;  %v458_v46 = vadd.f32 %v442_v26, %v382_v36  ;;  %2129 = vmatpush.bf16.msra.mxu0 %v2644_v27  ;;  %2142 = vmatpush.bf16.msra.mxu1 %v2772_v28  ;;  %v2740_v63 = vor.u32 %v3609_v50, %v2737_v44  ;;  %v2993_v25 = vld [vmem:[#allocation11 + $0x3b0] sm:$0xf0]  ;;  %v445_v28 = vperm.slane %v4113_v6, 6  ;;  %v3637_v36 = vld [vmem:[#allocation11 + $0x284] sm:$0xf] }
  0xcd   :  { %v2577_v20 = vld [vmem:[#allocation11 + $0x70] sm:$0xf0]  ;;  %v2996_v35 = vor.u32 %v3673_v24, %v2993_v25  ;;  %v3597_v50 = vld [vmem:[#allocation11 + $0x144] sm:$0xf] }
  0xce   :  { %v465_v51 = vmax.f32 %v457_v45, 0.0  ;;  %v466_v52 = vmax.f32 %v458_v46, 0.0  ;;  %v2849_v37 = vld [vmem:[#allocation11 + $0x290] sm:$0xf0]  ;;  %v2580_v46 = vor.u32 %v3569_v29, %v2577_v20  ;;  %v3557_v24 = vld [vmem:[#allocation11 + $0x4] sm:$0xf] }
  0xcf   :  { %v2561_v43 = vld [vmem:[#allocation11 + $0x50] sm:$0xf0] }
  0xd0   :  { %v4130_v60 = vpack.c.bf16 %v465_v51, %v465_v51  ;;  %v4132_v61 = vpack.c.bf16 %v466_v52, %v466_v52  ;;  %2130 = vmatpush.bf16.msra.mxu0 %v2628_v39  ;;  %2143 = vmatpush.bf16.msra.mxu1 %v2756_v47  ;;  %v2977_v39 = vld [vmem:[#allocation11 + $0x390] sm:$0xf0] }
  0xd1   :  { %v370_v7 = vpop.f32.mrf.mxu2  ;;  %v383_v8 = vpop.f32.mrf.mxu3  ;;  %v2689_v44 = vld [vmem:[#allocation11 + $0x150] sm:$0xf0] }
  0xd2   :  { %2059 = vmatmul.bf16.vlgmr.msra.gmra.mxu2 %v4130_v60  ;;  %2072 = vmatmul.bf16.vlgmr.msra.gmra.mxu3 %v4132_v61  ;;  %v394_v12 = vpop.f32.mrf.mxu0  ;;  %v407_v13 = vpop.f32.mrf.mxu1  ;;  %v3593_v8 = vld [vmem:[#allocation11 + $0x124] sm:$0xf]  ;;  %v2529_v25 = vld [vmem:[#allocation11 + $0x10] sm:$0xf0] }
  0xd3   :  { %2155 = vmatpush.bf16.msra.mxu2 %v2900_v54  ;;  %2168 = vmatpush.bf16.msra.mxu3 %v3028_v55  ;;  %v395_v15 = vadd.f32 %v394_v12, %v4105_v0  ;;  %v408_v16 = vadd.f32 %v407_v13, %v4107_v1  ;;  %v2705_v0 = vld [vmem:[#allocation11 + $0x170] sm:$0xf0]  ;;  %v2980_v54 = vor.u32 %v3669_v38, %v2977_v39  ;;  %v3633_v55 = vld [vmem:[#allocation11 + $0x264] sm:$0xf] }
  0xd4   :  { %2131 = vmatpush.bf16.msra.mxu0 %v2612_v56  ;;  %2144 = vmatpush.bf16.msra.mxu1 %v2740_v63  ;;  %v2708_v47 = vor.u32 %v3601_v32, %v2705_v0  ;;  %v3561_v63 = vld [vmem:[#allocation11 + $0x24] sm:$0xf]  ;;  %v2836_v10 = vor.u32 %v3633_v55, %v2833_v58  ;;  %v2676_v21 = vor.u32 %v3593_v8, %v2673_v9  ;;  %v3153_v29 = vld [vmem:[#allocation11 + $0x4f0] sm:$0xf0] }
  0xd5   :  { %v459_v26 = vadd.f32 %v443_v53, %v395_v15  ;;  %v460_v27 = vadd.f32 %v444_v62, %v408_v16  ;;  %v2852_v53 = vor.u32 %v3637_v36, %v2849_v37  ;;  %v2692_v62 = vor.u32 %v3597_v50, %v2689_v44  ;;  %v3629_v12 = vld [vmem:[#allocation11 + $0x244] sm:$0xf]  ;;  %v2817_v15 = vld [vmem:[#allocation11 + $0x250] sm:$0xf0] }
  0xd6   :  { %v3661_v16 = vld [vmem:[#allocation11 + $0x344] sm:$0xf]  ;;  %v2548_v18 = vor.u32 %v3561_v63, %v2545_v4  ;;  %v3281_v0 = vld [vmem:[#allocation11 + $0x5f0] sm:$0xf0]  ;;  %v2532_v36 = vor.u32 %v3557_v24, %v2529_v25 }
  0xd7   :  { %v467_v33 = vmax.f32 %v459_v26, 0.0  ;;  %v468_v1 = vmax.f32 %v460_v27, 0.0  ;;  %2156 = vmatpush.bf16.msra.mxu2 %v2884_v14  ;;  %2169 = vmatpush.bf16.msra.mxu3 %v3012_v17  ;;  %v2945_v17 = vld [vmem:[#allocation11 + $0x350] sm:$0xf0]  ;;  %v3589_v26 = vld [vmem:[#allocation11 + $0x104] sm:$0xf] }
  0xd8   :  { %2132 = vmatpush.bf16.msra.mxu0 %v2596_v22  ;;  %2145 = vmatpush.bf16.msra.mxu1 %v2724_v23  ;;  %v2657_v27 = vld [vmem:[#allocation11 + $0x110] sm:$0xf0]  ;;  %v2948_v20 = vor.u32 %v3661_v16, %v2945_v17  ;;  %v3745_v32 = vld [vmem:[#allocation11 + $0x5e4] sm:$0xf] }
  0xd9   :  { %v4141_v40 = vpack.c.bf16 %v467_v33, %v467_v33  ;;  %v4143_v41 = vpack.c.bf16 %v468_v1, %v468_v1  ;;  %v420_v42 = vpop.f32.mrf.mxu2  ;;  %v433_v45 = vpop.f32.mrf.mxu3  ;;  %v3625_v33 = vld [vmem:[#allocation11 + $0x224] sm:$0xf]  ;;  %v2801_v1 = vld [vmem:[#allocation11 + $0x230] sm:$0xf0]  ;;  %v2660_v37 = vor.u32 %v3589_v26, %v2657_v27  ;;  %v3284_v39 = vor.u32 %v3745_v32, %v3281_v0 }
  0xda   :  { %v421_v49 = vadd.f32 %v420_v42, %v4109_v2  ;;  %v434_v6 = vadd.f32 %v433_v45, %v4111_v3  ;;  %v396_v51 = vpop.f32.mrf.mxu0  ;;  %v409_v52 = vpop.f32.mrf.mxu1  ;;  %v3665_v2 = vld [vmem:[#allocation11 + $0x364] sm:$0xf]  ;;  %v2564_v3 = vor.u32 %v3565_v48, %v2561_v43  ;;  %v3137_v45 = vld [vmem:[#allocation11 + $0x4d0] sm:$0xf0] }
  0xdb   :  { %2157 = vmatpush.bf16.msra.mxu2 %v2868_v30  ;;  %2170 = vmatpush.bf16.msra.mxu3 %v2996_v35  ;;  %v2964_v11 = vor.u32 %v3665_v2, %v2961_v59  ;;  %v2820_v30 = vor.u32 %v3629_v12, %v2817_v15  ;;  %v2929_v35 = vld [vmem:[#allocation11 + $0x330] sm:$0xf0]  ;;  %v3709_v42 = vld [vmem:[#allocation11 + $0x4c4] sm:$0xf] }
  0xdc   :  { %v461_v56 = vadd.f32 %v445_v28, %v421_v49  ;;  %v462_v57 = vadd.f32 %v446_v34, %v434_v6  ;;  %2085 = vmatmul.bf16.vlgmr.msrb.gmra.mxu0 %v4141_v40  ;;  %2098 = vmatmul.bf16.vlgmr.msrb.gmra.mxu1 %v4143_v41  ;;  %v3713_v28 = vld [vmem:[#allocation11 + $0x4e4] sm:$0xf]  ;;  %v3265_v49 = vld [vmem:[#allocation11 + $0x5d0] sm:$0xf0]  ;;  %v3140_v55 = vor.u32 %v3709_v42, %v3137_v45 }
  0xdd   :  { %2133 = vmatpush.bf16.msra.mxu0 %v2580_v46  ;;  %2146 = vmatpush.bf16.msra.mxu1 %v2708_v47  ;;  %v3657_v34 = vld [vmem:[#allocation11 + $0x324] sm:$0xf]  ;;  %v3156_v38 = vor.u32 %v3713_v28, %v3153_v29  ;;  %v2804_v47 = vor.u32 %v3625_v33, %v2801_v1  ;;  %v2785_v43 = vld [vmem:[#allocation11 + $0x210] sm:$0xf0] }
  0xde   :  { %v469_v5 = vmax.f32 %v461_v56, 0.0  ;;  %v470_v7 = vmax.f32 %v462_v57, 0.0  ;;  %v3741_v46 = vld [vmem:[#allocation11 + $0x5c4] sm:$0xf]  ;;  %v2932_v48 = vor.u32 %v3657_v34, %v2929_v35  ;;  %v2913_v44 = vld [vmem:[#allocation11 + $0x310] sm:$0xf0] }
  0xdf   :  { %2158 = vmatpush.bf16.msra.mxu2 %v2852_v53  ;;  %2171 = vmatpush.bf16.msra.mxu3 %v2980_v54  ;;  %v3621_v6 = vld [vmem:[#allocation11 + $0x204] sm:$0xf]  ;;  %v3409_v52 = vld [vmem:[#allocation11 + $0x6f0] sm:$0xf0]  ;;  %v3268_v56 = vor.u32 %v3741_v46, %v3265_v49 }
  0xe0   :  { %v4149_v13 = vpack.c.bf16 %v469_v5, %v469_v5  ;;  %v4151_v14 = vpack.c.bf16 %v470_v7, %v470_v7  ;;  %v3653_v50 = vld [vmem:[#allocation11 + $0x304] sm:$0xf]  ;;  %v3537_v54 = vld [vmem:[#allocation11 + $0x7f0] sm:$0xf0]  ;;  %v2788_v58 = vor.u32 %v3621_v6, %v2785_v43 }
  0xe1   :  { %2134 = vmatpush.bf16.msra.mxu0 %v2564_v3  ;;  %2147 = vmatpush.bf16.msra.mxu1 %v2692_v62  ;;  %v422_v22 = vpop.f32.mrf.mxu2  ;;  %v435_v23 = vpop.f32.mrf.mxu3  ;;  %v3777_v51 = vld [vmem:[#allocation11 + $0x6e4] sm:$0xf]  ;;  %v2916_v2 = vor.u32 %v3653_v50, %v2913_v44  ;;  %v3121_v59 = vld [vmem:[#allocation11 + $0x4b0] sm:$0xf0] }
  0xe2   :  { %2111 = vmatmul.bf16.vlgmr.msrb.gmra.mxu2 %v4149_v13  ;;  %2124 = vmatmul.bf16.vlgmr.msrb.gmra.mxu3 %v4151_v14  ;;  %v3809_v53 = vld [vmem:[#allocation11 + $0x7e4] sm:$0xf]  ;;  %v3249_v62 = vld [vmem:[#allocation11 + $0x5b0] sm:$0xf0]  ;;  %v3412_v63 = vor.u32 %v3777_v51, %v3409_v52 }
  0xe3   :  { %2159 = vmatpush.bf16.msra.mxu2 %v2836_v10  ;;  %2172 = vmatpush.bf16.msra.mxu3 %v2964_v11  ;;  %v3705_v57 = vld [vmem:[#allocation11 + $0x4a4] sm:$0xf]  ;;  %v3540_v4 = vor.u32 %v3809_v53, %v3537_v54  ;;  %v3393_v7 = vld [vmem:[#allocation11 + $0x6d0] sm:$0xf0] }
  0xe4   :  { %v3737_v3 = vld [vmem:[#allocation11 + $0x5a4] sm:$0xf]  ;;  %v3521_v9 = vld [vmem:[#allocation11 + $0x7d0] sm:$0xf0]  ;;  %v3124_v10 = vor.u32 %v3705_v57, %v3121_v59 }
  0xe5   :  { %2135 = vmatpush.bf16.msra.mxu0 %v2548_v18  ;;  %2148 = vmatpush.bf16.msra.mxu1 %v2676_v21  ;;  %v3773_v5 = vld [vmem:[#allocation11 + $0x6c4] sm:$0xf]  ;;  %v3252_v11 = vor.u32 %v3737_v3, %v3249_v62  ;;  %v3105_v15 = vld [vmem:[#allocation11 + $0x490] sm:$0xf0] }
  0xe6   :  { %v3805_v8 = vld [vmem:[#allocation11 + $0x7c4] sm:$0xf]  ;;  %v3233_v17 = vld [vmem:[#allocation11 + $0x590] sm:$0xf0]  ;;  %v3396_v18 = vor.u32 %v3773_v5, %v3393_v7 }
  0xe7   :  { %2160 = vmatpush.bf16.msra.mxu2 %v2820_v30  ;;  %2173 = vmatpush.bf16.msra.mxu3 %v2948_v20  ;;  %v3701_v12 = vld [vmem:[#allocation11 + $0x484] sm:$0xf]  ;;  %v3524_v21 = vor.u32 %v3805_v8, %v3521_v9  ;;  %v3377_v23 = vld [vmem:[#allocation11 + $0x6b0] sm:$0xf0]  ;;  %v2647_v8 = vld [vmem:[#allocation11 + $0xe8] sm:$0xf] }
  0xe8   :  { %v3733_v16 = vld [vmem:[#allocation11 + $0x584] sm:$0xf]  ;;  %v3505_v25 = vld [vmem:[#allocation11 + $0x7b0] sm:$0xf0]  ;;  %v3108_v26 = vor.u32 %v3701_v12, %v3105_v15  ;;  %v3588_v9 = vld [vmem:[#allocation11 + $0xf4] sm:$0xf0] }
  0xe9   :  { %2136 = vmatpush.bf16.msra.mxu0 %v2532_v36  ;;  %2149 = vmatpush.bf16.msra.mxu1 %v2660_v37  ;;  %v3769_v22 = vld [vmem:[#allocation11 + $0x6a4] sm:$0xf]  ;;  %v3236_v27 = vor.u32 %v3733_v16, %v3233_v17  ;;  %v3089_v29 = vld [vmem:[#allocation11 + $0x470] sm:$0xf0]  ;;  %v2775_v12 = vld [vmem:[#allocation11 + $0x1e8] sm:$0xf] }
  0xea   :  { %v3801_v24 = vld [vmem:[#allocation11 + $0x7a4] sm:$0xf]  ;;  %v3217_v20 = vld [vmem:[#allocation11 + $0x570] sm:$0xf0]  ;;  %v3380_v32 = vor.u32 %v3769_v22, %v3377_v23  ;;  %v3620_v15 = vld [vmem:[#allocation11 + $0x1f4] sm:$0xf0] }
  0xeb   :  { %2161 = vmatpush.bf16.msra.mxu2 %v2804_v47  ;;  %2174 = vmatpush.bf16.msra.mxu3 %v2932_v48  ;;  %v3697_v28 = vld [vmem:[#allocation11 + $0x464] sm:$0xf]  ;;  %v3508_v0 = vor.u32 %v3801_v24, %v3505_v25  ;;  %v3361_v1 = vld [vmem:[#allocation11 + $0x690] sm:$0xf0]  ;;  %v2648_v24 = vor.u32 %v3588_v9, %v2647_v8  ;;  %v2776_v25 = vor.u32 %v3620_v15, %v2775_v12  ;;  %v2583_v8 = vld [vmem:[#allocation11 + $0x68] sm:$0xf] }
  0xec   :  { %2137 = vmatmul.bf16.vlgmr.msra.gmra.mxu0 %v4121_v31  ;;  %2150 = vmatmul.bf16.vlgmr.msra.gmra.mxu1 %v4123_v19  ;;  %v3729_v30 = vld [vmem:[#allocation11 + $0x564] sm:$0xf]  ;;  %v3489_v35 = vld [vmem:[#allocation11 + $0x790] sm:$0xf0]  ;;  %v3092_v36 = vor.u32 %v3697_v28, %v3089_v29  ;;  %v2759_v28 = vld [vmem:[#allocation11 + $0x1c8] sm:$0xf] }
  0xed   :  { %2181 = vmatpush.bf16.msrb.mxu0 %v3156_v38  ;;  %2194 = vmatpush.bf16.msrb.mxu1 %v3284_v39  ;;  %v3765_v33 = vld [vmem:[#allocation11 + $0x684] sm:$0xf]  ;;  %v3220_v37 = vor.u32 %v3729_v30, %v3217_v20  ;;  %v3073_v39 = vld [vmem:[#allocation11 + $0x450] sm:$0xf0]  ;;  %v3616_v20 = vld [vmem:[#allocation11 + $0x1d4] sm:$0xf0] }
  0xee   :  { %v3797_v34 = vld [vmem:[#allocation11 + $0x784] sm:$0xf]  ;;  %v3201_v45 = vld [vmem:[#allocation11 + $0x550] sm:$0xf0]  ;;  %v3364_v46 = vor.u32 %v3765_v33, %v3361_v1  ;;  %v3572_v9 = vld [vmem:[#allocation11 + $0x74] sm:$0xf0] }
  0xef   :  { %2162 = vmatpush.bf16.msra.mxu2 %v2788_v58  ;;  %2175 = vmatpush.bf16.msra.mxu3 %v2916_v2  ;;  %v3693_v38 = vld [vmem:[#allocation11 + $0x444] sm:$0xf]  ;;  %v3492_v47 = vor.u32 %v3797_v34, %v3489_v35  ;;  %v3345_v49 = vld [vmem:[#allocation11 + $0x670] sm:$0xf0]  ;;  %v2903_v34 = vld [vmem:[#allocation11 + $0x2e8] sm:$0xf] }
  0xf0   :  { %v3725_v42 = vld [vmem:[#allocation11 + $0x544] sm:$0xf]  ;;  %v3473_v43 = vld [vmem:[#allocation11 + $0x770] sm:$0xf0]  ;;  %v3076_v50 = vor.u32 %v3693_v38, %v3073_v39  ;;  %v3652_v35 = vld [vmem:[#allocation11 + $0x2f4] sm:$0xf0]  ;;  %v2760_v39 = vor.u32 %v3616_v20, %v2759_v28 }
  0xf1   :  { %2182 = vmatpush.bf16.msrb.mxu0 %v3140_v55  ;;  %2195 = vmatpush.bf16.msrb.mxu1 %v3268_v56  ;;  %v3761_v48 = vld [vmem:[#allocation11 + $0x664] sm:$0xf]  ;;  %v3204_v44 = vor.u32 %v3725_v42, %v3201_v45  ;;  %v3057_v52 = vld [vmem:[#allocation11 + $0x430] sm:$0xf0]  ;;  %v2711_v12 = vld [vmem:[#allocation11 + $0x168] sm:$0xf] }
  0xf2   :  { %2163 = vmatmul.bf16.vlgmr.msra.gmra.mxu2 %v4130_v60  ;;  %2176 = vmatmul.bf16.vlgmr.msra.gmra.mxu3 %v4132_v61  ;;  %v3793_v6 = vld [vmem:[#allocation11 + $0x764] sm:$0xf]  ;;  %v3185_v54 = vld [vmem:[#allocation11 + $0x530] sm:$0xf0]  ;;  %v3348_v55 = vor.u32 %v3761_v48, %v3345_v49  ;;  %v2904_v48 = vor.u32 %v3652_v35, %v2903_v34  ;;  %v3604_v15 = vld [vmem:[#allocation11 + $0x174] sm:$0xf0] }
  0xf3   :  { %2207 = vmatpush.bf16.msrb.mxu2 %v3412_v63  ;;  %2220 = vmatpush.bf16.msrb.mxu3 %v3540_v4  ;;  %v3689_v51 = vld [vmem:[#allocation11 + $0x424] sm:$0xf]  ;;  %v3476_v56 = vor.u32 %v3793_v6, %v3473_v43  ;;  %v3329_v58 = vld [vmem:[#allocation11 + $0x650] sm:$0xf0]  ;;  %v2743_v6 = vld [vmem:[#allocation11 + $0x1a8] sm:$0xf] }
  0xf4   :  { %v3721_v53 = vld [vmem:[#allocation11 + $0x524] sm:$0xf]  ;;  %v3457_v59 = vld [vmem:[#allocation11 + $0x750] sm:$0xf0]  ;;  %v3060_v3 = vor.u32 %v3689_v51, %v3057_v52  ;;  %v3612_v43 = vld [vmem:[#allocation11 + $0x1b4] sm:$0xf0] }
  0xf5   :  { %2183 = vmatpush.bf16.msrb.mxu0 %v3124_v10  ;;  %2196 = vmatpush.bf16.msrb.mxu1 %v3252_v11  ;;  %v3757_v57 = vld [vmem:[#allocation11 + $0x644] sm:$0xf]  ;;  %v3188_v62 = vor.u32 %v3721_v53, %v3185_v54  ;;  %v3041_v4 = vld [vmem:[#allocation11 + $0x410] sm:$0xf0]  ;;  %v3015_v51 = vld [vmem:[#allocation11 + $0x3c8] sm:$0xf]  ;;  %v2744_v54 = vor.u32 %v3612_v43, %v2743_v6 }
  0xf6   :  { %v3789_v2 = vld [vmem:[#allocation11 + $0x744] sm:$0xf]  ;;  %v3169_v7 = vld [vmem:[#allocation11 + $0x510] sm:$0xf0]  ;;  %v3332_v10 = vor.u32 %v3757_v57, %v3329_v58  ;;  %v3680_v52 = vld [vmem:[#allocation11 + $0x3d4] sm:$0xf0] }
  0xf7   :  { %2208 = vmatpush.bf16.msrb.mxu2 %v3396_v18  ;;  %2221 = vmatpush.bf16.msrb.mxu3 %v3524_v21  ;;  %v3685_v63 = vld [vmem:[#allocation11 + $0x404] sm:$0xf]  ;;  %v3460_v11 = vor.u32 %v3789_v2, %v3457_v59  ;;  %v3313_v17 = vld [vmem:[#allocation11 + $0x630] sm:$0xf0]  ;;  %v3016_v58 = vor.u32 %v3680_v52, %v3015_v51  ;;  %v2727_v2 = vld [vmem:[#allocation11 + $0x188] sm:$0xf] }
  0xf8   :  { %v3717_v5 = vld [vmem:[#allocation11 + $0x504] sm:$0xf]  ;;  %v3441_v21 = vld [vmem:[#allocation11 + $0x730] sm:$0xf0]  ;;  %v3044_v22 = vor.u32 %v3685_v63, %v3041_v4  ;;  %v3608_v59 = vld [vmem:[#allocation11 + $0x194] sm:$0xf0] }
  0xf9   :  { %2184 = vmatpush.bf16.msrb.mxu0 %v3108_v26  ;;  %2197 = vmatpush.bf16.msrb.mxu1 %v3236_v27  ;;  %v3753_v16 = vld [vmem:[#allocation11 + $0x624] sm:$0xf]  ;;  %v3172_v23 = vor.u32 %v3717_v5, %v3169_v7  ;;  %v2631_v26 = vld [vmem:[#allocation11 + $0xc8] sm:$0xf]  ;;  %v3584_v27 = vld [vmem:[#allocation11 + $0xd4] sm:$0xf0]  ;;  %v2728_v7 = vor.u32 %v3608_v59, %v2727_v2 }
  0xfa   :  { %v3785_v18 = vld [vmem:[#allocation11 + $0x724] sm:$0xf]  ;;  %v3316_v29 = vor.u32 %v3753_v16, %v3313_v17  ;;  %v3425_v1 = vld [vmem:[#allocation11 + $0x710] sm:$0xf0]  ;;  %v2632_v38 = vor.u32 %v3584_v27, %v2631_v26  ;;  %v2999_v63 = vld [vmem:[#allocation11 + $0x3a8] sm:$0xf] }
  0xfb   :  { %2209 = vmatpush.bf16.msrb.mxu2 %v3380_v32  ;;  %2222 = vmatpush.bf16.msrb.mxu3 %v3508_v0  ;;  %v3444_v30 = vor.u32 %v3785_v18, %v3441_v21  ;;  %v3749_v32 = vld [vmem:[#allocation11 + $0x604] sm:$0xf]  ;;  %v3297_v0 = vld [vmem:[#allocation11 + $0x610] sm:$0xf0]  ;;  %v3676_v4 = vld [vmem:[#allocation11 + $0x3b4] sm:$0xf0] }
  0xfc   :  { %v3781_v33 = vld [vmem:[#allocation11 + $0x704] sm:$0xf]  ;;  %v3300_v42 = vor.u32 %v3749_v32, %v3297_v0  ;;  %v2855_v16 = vld [vmem:[#allocation11 + $0x288] sm:$0xf]  ;;  %v3640_v17 = vld [vmem:[#allocation11 + $0x294] sm:$0xf0] }
  0xfd   :  { %2185 = vmatpush.bf16.msrb.mxu0 %v3092_v36  ;;  %2198 = vmatpush.bf16.msrb.mxu1 %v3220_v37  ;;  %v3031_v36 = vld [vmem:[#allocation11 + $0x3e8] sm:$0xf]  ;;  %v3684_v37 = vld [vmem:[#allocation11 + $0x3f4] sm:$0xf0]  ;;  %v3428_v45 = vor.u32 %v3781_v33, %v3425_v1  ;;  %v2856_v26 = vor.u32 %v3640_v17, %v2855_v16 }
  0xfe   :  { %v3032_v49 = vor.u32 %v3684_v37, %v3031_v36  ;;  %v2983_v18 = vld [vmem:[#allocation11 + $0x388] sm:$0xf]  ;;  %v3672_v21 = vld [vmem:[#allocation11 + $0x394] sm:$0xf0] }
  0xff   :  { %2210 = vmatpush.bf16.msrb.mxu2 %v3364_v46  ;;  %2223 = vmatpush.bf16.msrb.mxu3 %v3492_v47  ;;  %v2615_v46 = vld [vmem:[#allocation11 + $0xa8] sm:$0xf]  ;;  %v3580_v47 = vld [vmem:[#allocation11 + $0xb4] sm:$0xf0]  ;;  %v2984_v27 = vor.u32 %v3672_v21, %v2983_v18 }
 0x100   :  { %v2616_v53 = vor.u32 %v3580_v47, %v2615_v46  ;;  %v2695_v28 = vld [vmem:[#allocation11 + $0x148] sm:$0xf]  ;;  %v3636_v20 = vld [vmem:[#allocation11 + $0x274] sm:$0xf0] }
 0x101   :  { %2186 = vmatpush.bf16.msrb.mxu0 %v3076_v50  ;;  %2199 = vmatpush.bf16.msrb.mxu1 %v3204_v44  ;;  %v2887_v50 = vld [vmem:[#allocation11 + $0x2c8] sm:$0xf]  ;;  %v3648_v44 = vld [vmem:[#allocation11 + $0x2d4] sm:$0xf0] }
 0x102   :  { %v2888_v57 = vor.u32 %v3648_v44, %v2887_v50  ;;  %v2967_v32 = vld [vmem:[#allocation11 + $0x368] sm:$0xf]  ;;  %v3668_v0 = vld [vmem:[#allocation11 + $0x374] sm:$0xf0] }
 0x103   :  { %2211 = vmatpush.bf16.msrb.mxu2 %v3348_v55  ;;  %2224 = vmatpush.bf16.msrb.mxu3 %v3476_v56  ;;  %v2599_v55 = vld [vmem:[#allocation11 + $0x88] sm:$0xf]  ;;  %v3576_v56 = vld [vmem:[#allocation11 + $0x94] sm:$0xf0]  ;;  %v2968_v37 = vor.u32 %v3668_v0, %v2967_v32 }
 0x104   :  { %v2600_v5 = vor.u32 %v3576_v56, %v2599_v55  ;;  %v2551_v34 = vld [vmem:[#allocation11 + $0x28] sm:$0xf]  ;;  %v3564_v35 = vld [vmem:[#allocation11 + $0x34] sm:$0xf0] }
 0x105   :  { %2187 = vmatpush.bf16.msrb.mxu0 %v3060_v3  ;;  %2200 = vmatpush.bf16.msrb.mxu1 %v3188_v62  ;;  %v2871_v3 = vld [vmem:[#allocation11 + $0x2a8] sm:$0xf]  ;;  %v3644_v62 = vld [vmem:[#allocation11 + $0x2b4] sm:$0xf0] }
 0x106   :  { %v2951_v46 = vld [vmem:[#allocation11 + $0x348] sm:$0xf]  ;;  %v3664_v47 = vld [vmem:[#allocation11 + $0x354] sm:$0xf0] }
 0x107   :  { %2212 = vmatpush.bf16.msrb.mxu2 %v3332_v10  ;;  %2225 = vmatpush.bf16.msrb.mxu3 %v3460_v11  ;;  %v2872_v10 = vor.u32 %v3644_v62, %v2871_v3  ;;  %v3000_v11 = vor.u32 %v3676_v4, %v2999_v63  ;;  %v2535_v6 = vld [vmem:[#allocation11 + $0x8] sm:$0xf]  ;;  %v3560_v43 = vld [vmem:[#allocation11 + $0x14] sm:$0xf0]  ;;  %v2952_v51 = vor.u32 %v3664_v47, %v2951_v46 }
 0x108   :  { %v2663_v50 = vld [vmem:[#allocation11 + $0x108] sm:$0xf]  ;;  %v3592_v52 = vld [vmem:[#allocation11 + $0x114] sm:$0xf0]  ;;  %v2536_v3 = vor.u32 %v3560_v43, %v2535_v6 }
 0x109   :  { %2188 = vmatpush.bf16.msrb.mxu0 %v3044_v22  ;;  %2201 = vmatpush.bf16.msrb.mxu1 %v3172_v23  ;;  %v2584_v22 = vor.u32 %v3572_v9, %v2583_v8  ;;  %v2712_v23 = vor.u32 %v3604_v15, %v2711_v12  ;;  %v3287_v55 = vld [vmem:[#allocation11 + $0x5e8] sm:$0xf]  ;;  %v3748_v56 = vld [vmem:[#allocation11 + $0x5f4] sm:$0xf0]  ;;  %v2664_v62 = vor.u32 %v3592_v52, %v2663_v50 }
 0x10a   :  { %v2935_v2 = vld [vmem:[#allocation11 + $0x328] sm:$0xf]  ;;  %v3660_v59 = vld [vmem:[#allocation11 + $0x334] sm:$0xf0]  ;;  %v3288_v4 = vor.u32 %v3748_v56, %v3287_v55 }
 0x10b   :  { %2213 = vmatpush.bf16.msrb.mxu2 %v3316_v29  ;;  %2226 = vmatpush.bf16.msrb.mxu3 %v3444_v30  ;;  %v3600_v29 = vld [vmem:[#allocation11 + $0x154] sm:$0xf0]  ;;  %v2839_v30 = vld [vmem:[#allocation11 + $0x268] sm:$0xf] }
 0x10c   :  { %2189 = vmatmul.bf16.vlgmr.msrb.gmra.mxu0 %v4141_v40  ;;  %2202 = vmatmul.bf16.vlgmr.msrb.gmra.mxu1 %v4143_v41  ;;  %v2696_v1 = vor.u32 %v3600_v29, %v2695_v28  ;;  %v2840_v36 = vor.u32 %v3636_v20, %v2839_v30  ;;  %v3271_v8 = vld [vmem:[#allocation11 + $0x5c8] sm:$0xf]  ;;  %v3624_v15 = vld [vmem:[#allocation11 + $0x214] sm:$0xf0] }
 0x10d   :  { %2233 = vmatpush.bf16.msra.mxu0 %v2648_v24  ;;  %2246 = vmatpush.bf16.msra.mxu1 %v2776_v25  ;;  %v2567_v24 = vld [vmem:[#allocation11 + $0x48] sm:$0xf]  ;;  %v3568_v25 = vld [vmem:[#allocation11 + $0x54] sm:$0xf0] }
 0x10e   :  { %v2568_v33 = vor.u32 %v3568_v25, %v2567_v24  ;;  %v2791_v12 = vld [vmem:[#allocation11 + $0x208] sm:$0xf]  ;;  %v3656_v17 = vld [vmem:[#allocation11 + $0x314] sm:$0xf0] }
 0x10f   :  { %2214 = vmatpush.bf16.msrb.mxu2 %v3300_v42  ;;  %2227 = vmatpush.bf16.msrb.mxu3 %v3428_v45  ;;  %v2823_v42 = vld [vmem:[#allocation11 + $0x248] sm:$0xf]  ;;  %v3632_v45 = vld [vmem:[#allocation11 + $0x254] sm:$0xf0] }
 0x110   :  { %v2824_v44 = vor.u32 %v3632_v45, %v2823_v42  ;;  %v2919_v16 = vld [vmem:[#allocation11 + $0x308] sm:$0xf]  ;;  %v3780_v21 = vld [vmem:[#allocation11 + $0x6f4] sm:$0xf0] }
 0x111   :  { %2234 = vmatpush.bf16.msra.mxu0 %v2632_v38  ;;  %2247 = vmatpush.bf16.msra.mxu1 %v2760_v39  ;;  %v2679_v38 = vld [vmem:[#allocation11 + $0x128] sm:$0xf]  ;;  %v3596_v39 = vld [vmem:[#allocation11 + $0x134] sm:$0xf0] }
 0x112   :  { %2215 = vmatmul.bf16.vlgmr.msrb.gmra.mxu2 %v4149_v13  ;;  %2228 = vmatmul.bf16.vlgmr.msrb.gmra.mxu3 %v4151_v14  ;;  %v3415_v18 = vld [vmem:[#allocation11 + $0x6e8] sm:$0xf]  ;;  %v3708_v29 = vld [vmem:[#allocation11 + $0x4b4] sm:$0xf0] }
 0x113   :  { %2259 = vmatpush.bf16.msra.mxu2 %v2904_v48  ;;  %2272 = vmatpush.bf16.msra.mxu3 %v3032_v49  ;;  %v2552_v48 = vor.u32 %v3564_v35, %v2551_v34  ;;  %v2680_v49 = vor.u32 %v3596_v39, %v2679_v38  ;;  %v3127_v28 = vld [vmem:[#allocation11 + $0x4a8] sm:$0xf]  ;;  %v3416_v30 = vor.u32 %v3780_v21, %v3415_v18  ;;  %v3740_v0 = vld [vmem:[#allocation11 + $0x5b4] sm:$0xf0] }
 0x114   :  { %v3255_v32 = vld [vmem:[#allocation11 + $0x5a8] sm:$0xf]  ;;  %v3808_v35 = vld [vmem:[#allocation11 + $0x7d4] sm:$0xf0] }
 0x115   :  { %2235 = vmatpush.bf16.msra.mxu0 %v2616_v53  ;;  %2248 = vmatpush.bf16.msra.mxu1 %v2744_v54  ;;  %v3159_v53 = vld [vmem:[#allocation11 + $0x4e8] sm:$0xf]  ;;  %v3716_v54 = vld [vmem:[#allocation11 + $0x4f4] sm:$0xf0] }
 0x116   :  { %v3160_v63 = vor.u32 %v3716_v54, %v3159_v53  ;;  %v3527_v34 = vld [vmem:[#allocation11 + $0x7c8] sm:$0xf]  ;;  %v3704_v39 = vld [vmem:[#allocation11 + $0x494] sm:$0xf0] }
 0x117   :  { %2260 = vmatpush.bf16.msra.mxu2 %v2888_v57  ;;  %2273 = vmatpush.bf16.msra.mxu3 %v3016_v58  ;;  %v2807_v57 = vld [vmem:[#allocation11 + $0x228] sm:$0xf]  ;;  %v3628_v58 = vld [vmem:[#allocation11 + $0x234] sm:$0xf0]  ;;  %v3528_v45 = vor.u32 %v3808_v35, %v3527_v34 }
 0x118   :  { %v2808_v9 = vor.u32 %v3628_v58, %v2807_v57  ;;  %v3111_v38 = vld [vmem:[#allocation11 + $0x488] sm:$0xf]  ;;  %v3736_v47 = vld [vmem:[#allocation11 + $0x594] sm:$0xf0] }
 0x119   :  { %2236 = vmatpush.bf16.msra.mxu0 %v2600_v5  ;;  %2249 = vmatpush.bf16.msra.mxu1 %v2728_v7  ;;  %v3143_v5 = vld [vmem:[#allocation11 + $0x4c8] sm:$0xf]  ;;  %v3712_v7 = vld [vmem:[#allocation11 + $0x4d4] sm:$0xf0]  ;;  %v3112_v50 = vor.u32 %v3704_v39, %v3111_v38  ;;  %v3618_v38 = vld [vmem:[#allocation11 + $0x1ec] sm:$0xf] }
 0x11a   :  { %v3144_v24 = vor.u32 %v3712_v7, %v3143_v5  ;;  %v3239_v46 = vld [vmem:[#allocation11 + $0x588] sm:$0xf]  ;;  %v3804_v43 = vld [vmem:[#allocation11 + $0x7b4] sm:$0xf0]  ;;  %v2777_v39 = vld [vmem:[#allocation11 + $0x1f8] sm:$0xf0] }
 0x11b   :  { %2261 = vmatpush.bf16.msra.mxu2 %v2872_v10  ;;  %2274 = vmatpush.bf16.msra.mxu3 %v3000_v11  ;;  %v2936_v10 = vor.u32 %v3660_v59, %v2935_v2  ;;  %v3744_v11 = vld [vmem:[#allocation11 + $0x5d4] sm:$0xf0]  ;;  %v3511_v6 = vld [vmem:[#allocation11 + $0x7a8] sm:$0xf] }
 0x11c   :  { %v3272_v25 = vor.u32 %v3744_v11, %v3271_v8  ;;  %v3700_v52 = vld [vmem:[#allocation11 + $0x474] sm:$0xf0]  ;;  %v3512_v54 = vor.u32 %v3804_v43, %v3511_v6  ;;  %v3223_v55 = vld [vmem:[#allocation11 + $0x568] sm:$0xf]  ;;  %v3582_v6 = vld [vmem:[#allocation11 + $0xcc] sm:$0xf] }
 0x11d   :  { %2237 = vmatpush.bf16.msra.mxu0 %v2584_v22  ;;  %2250 = vmatpush.bf16.msra.mxu1 %v2712_v23  ;;  %v3543_v22 = vld [vmem:[#allocation11 + $0x7e8] sm:$0xf]  ;;  %v3812_v23 = vld [vmem:[#allocation11 + $0x7f4] sm:$0xf0] }
 0x11e   :  { %v3544_v20 = vor.u32 %v3812_v23, %v3543_v22  ;;  %v3732_v56 = vld [vmem:[#allocation11 + $0x574] sm:$0xf0]  ;;  %v3367_v57 = vld [vmem:[#allocation11 + $0x688] sm:$0xf] }
 0x11f   :  { %2262 = vmatpush.bf16.msra.mxu2 %v2856_v26  ;;  %2275 = vmatpush.bf16.msra.mxu3 %v2984_v27  ;;  %v2792_v26 = vor.u32 %v3624_v15, %v2791_v12  ;;  %v2920_v27 = vor.u32 %v3656_v17, %v2919_v16  ;;  %v3768_v58 = vld [vmem:[#allocation11 + $0x694] sm:$0xf0]  ;;  %v3495_v2 = vld [vmem:[#allocation11 + $0x788] sm:$0xf] }
 0x120   :  { %v3800_v59 = vld [vmem:[#allocation11 + $0x794] sm:$0xf0]  ;;  %v3368_v5 = vor.u32 %v3768_v58, %v3367_v57  ;;  %v3207_v8 = vld [vmem:[#allocation11 + $0x548] sm:$0xf] }
 0x121   :  { %2238 = vmatpush.bf16.msra.mxu0 %v2568_v33  ;;  %2251 = vmatpush.bf16.msra.mxu1 %v2696_v1  ;;  %v3399_v33 = vld [vmem:[#allocation11 + $0x6c8] sm:$0xf]  ;;  %v3776_v1 = vld [vmem:[#allocation11 + $0x6d4] sm:$0xf0]  ;;  %v3496_v7 = vor.u32 %v3800_v59, %v3495_v2  ;;  %v3650_v2 = vld [vmem:[#allocation11 + $0x2ec] sm:$0xf] }
 0x122   :  { %v3400_v42 = vor.u32 %v3776_v1, %v3399_v33  ;;  %v3764_v11 = vld [vmem:[#allocation11 + $0x674] sm:$0xf0]  ;;  %v3479_v12 = vld [vmem:[#allocation11 + $0x768] sm:$0xf]  ;;  %v2905_v59 = vld [vmem:[#allocation11 + $0x2f8] sm:$0xf0] }
 0x123   :  { %2263 = vmatpush.bf16.msra.mxu2 %v2840_v36  ;;  %2276 = vmatpush.bf16.msra.mxu3 %v2968_v37  ;;  %v3128_v36 = vor.u32 %v3708_v29, %v3127_v28  ;;  %v3256_v37 = vor.u32 %v3740_v0, %v3255_v32  ;;  %v3796_v15 = vld [vmem:[#allocation11 + $0x774] sm:$0xf0]  ;;  %v3063_v18 = vld [vmem:[#allocation11 + $0x428] sm:$0xf] }
 0x124   :  { %v3692_v21 = vld [vmem:[#allocation11 + $0x434] sm:$0xf0]  ;;  %v3480_v23 = vor.u32 %v3796_v15, %v3479_v12  ;;  %v3463_v28 = vld [vmem:[#allocation11 + $0x748] sm:$0xf]  ;;  %v2908_v12 = vor.u32 %v3650_v2, %v2905_v59  ;;  %v3598_v2 = vld [vmem:[#allocation11 + $0x14c] sm:$0xf] }
 0x125   :  { %2239 = vmatpush.bf16.msra.mxu0 %v2552_v48  ;;  %2252 = vmatpush.bf16.msra.mxu1 %v2680_v49  ;;  %v3383_v48 = vld [vmem:[#allocation11 + $0x6a8] sm:$0xf]  ;;  %v3772_v49 = vld [vmem:[#allocation11 + $0x6b4] sm:$0xf0]  ;;  %v2697_v59 = vld [vmem:[#allocation11 + $0x158] sm:$0xf0] }
 0x126   :  { %v3384_v53 = vor.u32 %v3772_v49, %v3383_v48  ;;  %v3792_v29 = vld [vmem:[#allocation11 + $0x754] sm:$0xf0]  ;;  %v3047_v32 = vld [vmem:[#allocation11 + $0x408] sm:$0xf] }
 0x127   :  { %2264 = vmatpush.bf16.msra.mxu2 %v2824_v44  ;;  %2277 = vmatpush.bf16.msra.mxu3 %v2952_v51  ;;  %v3240_v44 = vor.u32 %v3736_v47, %v3239_v46  ;;  %v3095_v51 = vld [vmem:[#allocation11 + $0x468] sm:$0xf]  ;;  %v3688_v0 = vld [vmem:[#allocation11 + $0x414] sm:$0xf0]  ;;  %v3464_v34 = vor.u32 %v3792_v29, %v3463_v28  ;;  %v3574_v28 = vld [vmem:[#allocation11 + $0x8c] sm:$0xf] }
 0x128   :  { %v3175_v33 = vld [vmem:[#allocation11 + $0x508] sm:$0xf]  ;;  %v3720_v35 = vld [vmem:[#allocation11 + $0x514] sm:$0xf0]  ;;  %v3048_v48 = vor.u32 %v3688_v0, %v3047_v32  ;;  %v2601_v29 = vld [vmem:[#allocation11 + $0x98] sm:$0xf0] }
 0x129   :  { %2240 = vmatpush.bf16.msra.mxu0 %v2536_v3  ;;  %2253 = vmatpush.bf16.msra.mxu1 %v2664_v62  ;;  %v3096_v3 = vor.u32 %v3700_v52, %v3095_v51  ;;  %v3224_v62 = vor.u32 %v3732_v56, %v3223_v55  ;;  %v3447_v46 = vld [vmem:[#allocation11 + $0x728] sm:$0xf]  ;;  %v3788_v47 = vld [vmem:[#allocation11 + $0x734] sm:$0xf0]  ;;  %v3176_v49 = vor.u32 %v3720_v35, %v3175_v33  ;;  %v3614_v51 = vld [vmem:[#allocation11 + $0x1cc] sm:$0xf] }
 0x12a   :  { %v2761_v52 = vld [vmem:[#allocation11 + $0x1d8] sm:$0xf0]  ;;  %v3303_v55 = vld [vmem:[#allocation11 + $0x608] sm:$0xf]  ;;  %v3752_v56 = vld [vmem:[#allocation11 + $0x614] sm:$0xf0] }
 0x12b   :  { %2265 = vmatpush.bf16.msra.mxu2 %v2808_v9  ;;  %2278 = vmatpush.bf16.msra.mxu3 %v2936_v10  ;;  %v3728_v9 = vld [vmem:[#allocation11 + $0x554] sm:$0xf0]  ;;  %v3351_v10 = vld [vmem:[#allocation11 + $0x668] sm:$0xf]  ;;  %v3606_v0 = vld [vmem:[#allocation11 + $0x18c] sm:$0xf] }
 0x12c   :  { %2241 = vmatmul.bf16.vlgmr.msra.gmra.mxu0 %v4121_v31  ;;  %2254 = vmatmul.bf16.vlgmr.msra.gmra.mxu1 %v4123_v19  ;;  %v3208_v17 = vor.u32 %v3728_v9, %v3207_v8  ;;  %v3352_v22 = vor.u32 %v3764_v11, %v3351_v10  ;;  %v3431_v57 = vld [vmem:[#allocation11 + $0x708] sm:$0xf]  ;;  %v3784_v58 = vld [vmem:[#allocation11 + $0x714] sm:$0xf0]  ;;  %v3578_v9 = vld [vmem:[#allocation11 + $0xac] sm:$0xf] }
 0x12d   :  { %2285 = vmatpush.bf16.msrb.mxu0 %v3160_v63  ;;  %2298 = vmatpush.bf16.msrb.mxu1 %v3288_v4  ;;  %v3079_v63 = vld [vmem:[#allocation11 + $0x448] sm:$0xf]  ;;  %v3696_v4 = vld [vmem:[#allocation11 + $0x454] sm:$0xf0]  ;;  %v3432_v8 = vor.u32 %v3784_v58, %v3431_v57  ;;  %v2617_v10 = vld [vmem:[#allocation11 + $0xb8] sm:$0xf0] }
 0x12e   :  { %v3080_v16 = vor.u32 %v3696_v4, %v3079_v63  ;;  %v4170_v63 = vld [vmem:[%s4212_s6] sm:$0xf]  ;;  %v3610_v11 = vld [vmem:[#allocation11 + $0x1ac] sm:$0xf]  ;;  %v2729_v33 = vld [vmem:[#allocation11 + $0x198] sm:$0xf0] }
 0x12f   :  { %2266 = vmatpush.bf16.msra.mxu2 %v2792_v26  ;;  %2279 = vmatpush.bf16.msra.mxu3 %v2920_v27  ;;  %v3335_v26 = vld [vmem:[#allocation11 + $0x648] sm:$0xf]  ;;  %v3760_v27 = vld [vmem:[#allocation11 + $0x654] sm:$0xf0]  ;;  %v3674_v35 = vld [vmem:[#allocation11 + $0x3ac] sm:$0xf] }
 0x130   :  { %v3336_v1 = vor.u32 %v3760_v27, %v3335_v26 }
 0x131   :  { %2286 = vmatpush.bf16.msrb.mxu0 %v3144_v24  ;;  %2299 = vmatpush.bf16.msrb.mxu1 %v3272_v25  ;;  %v3191_v24 = vld [vmem:[#allocation11 + $0x528] sm:$0xf]  ;;  %v3724_v25 = vld [vmem:[#allocation11 + $0x534] sm:$0xf0] }
 0x132   :  { %2267 = vmatmul.bf16.vlgmr.msra.gmra.mxu2 %v4130_v60  ;;  %2280 = vmatmul.bf16.vlgmr.msra.gmra.mxu3 %v4132_v61 }
 0x133   :  { %2311 = vmatpush.bf16.msrb.mxu2 %v3416_v30  ;;  %2324 = vmatpush.bf16.msrb.mxu3 %v3544_v20  ;;  %v3064_v30 = vor.u32 %v3692_v21, %v3063_v18  ;;  %v3192_v20 = vor.u32 %v3724_v25, %v3191_v24  ;;  %v3646_v18 = vld [vmem:[#allocation11 + $0x2cc] sm:$0xf]  ;;  %v2889_v21 = vld [vmem:[#allocation11 + $0x2d8] sm:$0xf0]  ;;  %v2620_v24 = vor.u32 %v3578_v9, %v2617_v10 }
 0x134   :  { %v3562_v9 = vld [vmem:[#allocation11 + $0x2c] sm:$0xf]  ;;  %v2553_v10 = vld [vmem:[#allocation11 + $0x38] sm:$0xf0] }
 0x135   :  { %2287 = vmatpush.bf16.msrb.mxu0 %v3128_v36  ;;  %2300 = vmatpush.bf16.msrb.mxu1 %v3256_v37  ;;  %v3586_v36 = vld [vmem:[#allocation11 + $0xec] sm:$0xf]  ;;  %v2649_v37 = vld [vmem:[#allocation11 + $0xf8] sm:$0xf0] }
 0x136   :  { %v2652_v43 = vor.u32 %v3586_v36, %v2649_v37  ;;  %v3001_v36 = vld [vmem:[#allocation11 + $0x3b8] sm:$0xf0] }
 0x137   :  { %2312 = vmatpush.bf16.msrb.mxu2 %v3400_v42  ;;  %2325 = vmatpush.bf16.msrb.mxu3 %v3528_v45  ;;  %v3319_v42 = vld [vmem:[#allocation11 + $0x628] sm:$0xf]  ;;  %v3756_v45 = vld [vmem:[#allocation11 + $0x634] sm:$0xf0] }
 0x139   :  { %2288 = vmatpush.bf16.msrb.mxu0 %v3112_v50  ;;  %2301 = vmatpush.bf16.msrb.mxu1 %v3240_v44  ;;  %v2780_v50 = vor.u32 %v3618_v38, %v2777_v39  ;;  %v2633_v44 = vld [vmem:[#allocation11 + $0xd8] sm:$0xf0]  ;;  %v2604_v38 = vor.u32 %v3574_v28, %v2601_v29  ;;  %v2732_v39 = vor.u32 %v3606_v0, %v2729_v33  ;;  %v3558_v29 = vld [vmem:[#allocation11 + $0xc] sm:$0xf] }
 0x13a   :  { %v2636_v4 = vor.u32 %v3582_v6, %v2633_v44  ;;  %v3638_v6 = vld [vmem:[#allocation11 + $0x28c] sm:$0xf]  ;;  %v2985_v44 = vld [vmem:[#allocation11 + $0x398] sm:$0xf0] }
 0x13b   :  { %2313 = vmatpush.bf16.msrb.mxu2 %v3384_v53  ;;  %2326 = vmatpush.bf16.msrb.mxu3 %v3512_v54  ;;  %v3320_v53 = vor.u32 %v3756_v45, %v3319_v42  ;;  %v3448_v54 = vor.u32 %v3788_v47, %v3447_v46  ;;  %v3570_v42 = vld [vmem:[#allocation11 + $0x6c] sm:$0xf]  ;;  %v2585_v45 = vld [vmem:[#allocation11 + $0x78] sm:$0xf0]  ;;  %v3004_v47 = vor.u32 %v3674_v35, %v3001_v36 }
 0x13c   :  { %v3714_v35 = vld [vmem:[#allocation11 + $0x4ec] sm:$0xf]  ;;  %v3161_v36 = vld [vmem:[#allocation11 + $0x4f8] sm:$0xf0] }
 0x13d   :  { %2289 = vmatpush.bf16.msrb.mxu0 %v3096_v3  ;;  %2302 = vmatpush.bf16.msrb.mxu1 %v3224_v62  ;;  %v3682_v3 = vld [vmem:[#allocation11 + $0x3ec] sm:$0xf]  ;;  %v3033_v62 = vld [vmem:[#allocation11 + $0x3f8] sm:$0xf0] }
 0x13e   :  { %v3036_v15 = vor.u32 %v3682_v3, %v3033_v62  ;;  %v3634_v3 = vld [vmem:[#allocation11 + $0x26c] sm:$0xf]  ;;  %v2841_v62 = vld [vmem:[#allocation11 + $0x278] sm:$0xf0] }
 0x13f   :  { %2314 = vmatpush.bf16.msrb.mxu2 %v3368_v5  ;;  %2327 = vmatpush.bf16.msrb.mxu3 %v3496_v7  ;;  %v2764_v5 = vor.u32 %v3614_v51, %v2761_v52  ;;  %v3304_v7 = vor.u32 %v3752_v56, %v3303_v55  ;;  %v2588_v51 = vor.u32 %v3570_v42, %v2585_v45  ;;  %v3566_v55 = vld [vmem:[#allocation11 + $0x4c] sm:$0xf]  ;;  %v2569_v56 = vld [vmem:[#allocation11 + $0x58] sm:$0xf0] }
 0x140   :  { %v3626_v42 = vld [vmem:[#allocation11 + $0x22c] sm:$0xf]  ;;  %v2809_v45 = vld [vmem:[#allocation11 + $0x238] sm:$0xf0] }
 0x141   :  { %2290 = vmatpush.bf16.msrb.mxu0 %v3080_v16  ;;  %2303 = vmatpush.bf16.msrb.mxu1 %v3208_v17  ;;  %v2745_v16 = vld [vmem:[#allocation11 + $0x1b8] sm:$0xf0]  ;;  %v737_v17 = vperm.slane %v4170_v63, 0 }
 0x142   :  { %v2748_v25 = vor.u32 %v3610_v11, %v2745_v16 }
 0x143   :  { %2315 = vmatpush.bf16.msrb.mxu2 %v3352_v22  ;;  %2328 = vmatpush.bf16.msrb.mxu3 %v3480_v23  ;;  %v3678_v22 = vld [vmem:[#allocation11 + $0x3cc] sm:$0xf]  ;;  %v3017_v23 = vld [vmem:[#allocation11 + $0x3d8] sm:$0xf0] }
 0x144   :  { %v3020_v32 = vor.u32 %v3678_v22, %v3017_v23  ;;  %v2825_v23 = vld [vmem:[#allocation11 + $0x258] sm:$0xf0] }
 0x145   :  { %2291 = vmatpush.bf16.msrb.mxu0 %v3064_v30  ;;  %2304 = vmatpush.bf16.msrb.mxu1 %v3192_v20  ;;  %v2892_v20 = vor.u32 %v3646_v18, %v2889_v21  ;;  %v2681_v18 = vld [vmem:[#allocation11 + $0x138] sm:$0xf0]  ;;  %v3630_v21 = vld [vmem:[#allocation11 + $0x24c] sm:$0xf] }
 0x146   :  { %v2828_v33 = vor.u32 %v3630_v21, %v2825_v23  ;;  %v3257_v23 = vld [vmem:[#allocation11 + $0x5b8] sm:$0xf0] }
 0x147   :  { %2316 = vmatpush.bf16.msrb.mxu2 %v3336_v1  ;;  %2329 = vmatpush.bf16.msrb.mxu3 %v3464_v34  ;;  %v3642_v1 = vld [vmem:[#allocation11 + $0x2ac] sm:$0xf]  ;;  %v2873_v34 = vld [vmem:[#allocation11 + $0x2b8] sm:$0xf0] }
 0x148   :  { %v2034_v26 = vpop.f32.mrf.mxu0  ;;  %v2047_v27 = vpop.f32.mrf.mxu1  ;;  %v2876_v46 = vor.u32 %v3642_v1, %v2873_v34  ;;  %v2665_v34 = vld [vmem:[#allocation11 + $0x118] sm:$0xf0] }
 0x149   :  { %2292 = vmatpush.bf16.msrb.mxu0 %v3048_v48  ;;  %2305 = vmatpush.bf16.msrb.mxu1 %v3176_v49  ;;  %v2035_v30 = vadd.f32 %v2034_v26, %v737_v17  ;;  %v3602_v48 = vld [vmem:[#allocation11 + $0x16c] sm:$0xf]  ;;  %v2713_v49 = vld [vmem:[#allocation11 + $0x178] sm:$0xf0] }
 0x14a   :  { %v2716_v52 = vor.u32 %v3602_v48, %v2713_v49  ;;  %v3594_v17 = vld [vmem:[#allocation11 + $0x12c] sm:$0xf] }
 0x14b   :  { %2317 = vmatpush.bf16.msrb.mxu2 %v3320_v53  ;;  %2330 = vmatpush.bf16.msrb.mxu3 %v3448_v54  ;;  %v2048_v37 = vadd.f32 %v2047_v27, %v2035_v30  ;;  %v2556_v27 = vor.u32 %v3562_v9, %v2553_v10  ;;  %v2684_v28 = vor.u32 %v3594_v17, %v2681_v18  ;;  %v2537_v30 = vld [vmem:[#allocation11 + $0x18] sm:$0xf0] }
 0x14c   :  { %2293 = vmatmul.bf16.vlgmr.msrb.gmra.mxu0 %v4141_v40  ;;  %2306 = vmatmul.bf16.vlgmr.msrb.gmra.mxu1 %v4143_v41  ;;  %v2540_v49 = vor.u32 %v3558_v29, %v2537_v30  ;;  %v3129_v17 = vld [vmem:[#allocation11 + $0x4b8] sm:$0xf0] }
 0x14d   :  { %2337 = vmatpush.bf16.msra.mxu0 %v2652_v43  ;;  %2350 = vmatpush.bf16.msra.mxu1 %v2780_v50  ;;  %v2857_v43 = vld [vmem:[#allocation11 + $0x298] sm:$0xf0]  ;;  %v3670_v50 = vld [vmem:[#allocation11 + $0x38c] sm:$0xf] }
 0x14e   :  { %v2860_v57 = vor.u32 %v3638_v6, %v2857_v43  ;;  %v2988_v58 = vor.u32 %v3670_v50, %v2985_v44  ;;  %v3164_v44 = vor.u32 %v3714_v35, %v3161_v36  ;;  %v3241_v35 = vld [vmem:[#allocation11 + $0x598] sm:$0xf0]  ;;  %v3770_v36 = vld [vmem:[#allocation11 + $0x6ac] sm:$0xf] }
 0x14f   :  { %2318 = vmatpush.bf16.msrb.mxu2 %v3304_v7  ;;  %2331 = vmatpush.bf16.msrb.mxu3 %v3432_v8  ;;  %v2572_v7 = vor.u32 %v3566_v55, %v2569_v56  ;;  %v2700_v8 = vor.u32 %v3598_v2, %v2697_v59  ;;  %v2812_v55 = vor.u32 %v3626_v42, %v2809_v45  ;;  %v2793_v2 = vld [vmem:[#allocation11 + $0x218] sm:$0xf0]  ;;  %v3654_v59 = vld [vmem:[#allocation11 + $0x30c] sm:$0xf] }
 0x150   :  { %v2036_v53 = vpop.f32.mrf.mxu0  ;;  %v2049_v54 = vpop.f32.mrf.mxu1  ;;  %v3513_v42 = vld [vmem:[#allocation11 + $0x7b8] sm:$0xf0] }
 0x151   :  { %2338 = vmatpush.bf16.msra.mxu0 %v2636_v4  ;;  %2351 = vmatpush.bf16.msra.mxu1 %v2764_v5  ;;  %v3666_v4 = vld [vmem:[#allocation11 + $0x36c] sm:$0xf]  ;;  %v2969_v5 = vld [vmem:[#allocation11 + $0x378] sm:$0xf0] }
 0x152   :  { %2319 = vmatmul.bf16.vlgmr.msrb.gmra.mxu2 %v4149_v13  ;;  %2332 = vmatmul.bf16.vlgmr.msrb.gmra.mxu3 %v4151_v14  ;;  %v2972_v16 = vor.u32 %v3666_v4, %v2969_v5  ;;  %v3145_v53 = vld [vmem:[#allocation11 + $0x4d8] sm:$0xf0]  ;;  %v3742_v54 = vld [vmem:[#allocation11 + $0x5cc] sm:$0xf] }
 0x153   :  { %2363 = vmatpush.bf16.msra.mxu2 %v2908_v12  ;;  %2376 = vmatpush.bf16.msra.mxu3 %v3036_v15  ;;  %v2844_v15 = vor.u32 %v3634_v3, %v2841_v62  ;;  %v2921_v3 = vld [vmem:[#allocation11 + $0x318] sm:$0xf0]  ;;  %v3778_v62 = vld [vmem:[#allocation11 + $0x6ec] sm:$0xf] }
 0x154   :  { %v3417_v4 = vld [vmem:[#allocation11 + $0x6f8] sm:$0xf0]  ;;  %v3810_v5 = vld [vmem:[#allocation11 + $0x7ec] sm:$0xf] }
 0x155   :  { %2339 = vmatpush.bf16.msra.mxu0 %v2620_v24  ;;  %2352 = vmatpush.bf16.msra.mxu1 %v2748_v25  ;;  %v2060_v11 = vpop.f32.mrf.mxu2  ;;  %v2073_v12 = vpop.f32.mrf.mxu3  ;;  %v3662_v24 = vld [vmem:[#allocation11 + $0x34c] sm:$0xf]  ;;  %v2953_v25 = vld [vmem:[#allocation11 + $0x358] sm:$0xf0]  ;;  %v3420_v18 = vor.u32 %v3778_v62, %v3417_v4 }
 0x156   :  { %v2061_v22 = vadd.f32 %v2060_v11, %v2048_v37  ;;  %v2956_v1 = vor.u32 %v3662_v24, %v2953_v25  ;;  %v3774_v24 = vld [vmem:[#allocation11 + $0x6cc] sm:$0xf]  ;;  %v3401_v25 = vld [vmem:[#allocation11 + $0x6d8] sm:$0xf0] }
 0x157   :  { %2364 = vmatpush.bf16.msra.mxu2 %v2892_v20  ;;  %2377 = vmatpush.bf16.msra.mxu3 %v3020_v32  ;;  %v3590_v20 = vld [vmem:[#allocation11 + $0x10c] sm:$0xf] }
 0x158   :  { %v2074_v26 = vadd.f32 %v2073_v12, %v2061_v22  ;;  %v2668_v6 = vor.u32 %v3590_v20, %v2665_v34  ;;  %v3738_v22 = vld [vmem:[#allocation11 + $0x5ac] sm:$0xf] }
 0x159   :  { %2340 = vmatpush.bf16.msra.mxu0 %v2604_v38  ;;  %2353 = vmatpush.bf16.msra.mxu1 %v2732_v39  ;;  %v2086_v32 = vpop.f32.mrf.mxu0  ;;  %v2099_v0 = vpop.f32.mrf.mxu1  ;;  %v3746_v38 = vld [vmem:[#allocation11 + $0x5ec] sm:$0xf]  ;;  %v3289_v39 = vld [vmem:[#allocation11 + $0x5f8] sm:$0xf0] }
 0x15a   :  { %v2087_v37 = vadd.f32 %v2086_v32, %v2074_v26  ;;  %v3806_v26 = vld [vmem:[#allocation11 + $0x7cc] sm:$0xf]  ;;  %v3260_v32 = vor.u32 %v3738_v22, %v3257_v23 }
 0x15b   :  { %2365 = vmatpush.bf16.msra.mxu2 %v2876_v46  ;;  %2378 = vmatpush.bf16.msra.mxu3 %v3004_v47  ;;  %v3658_v46 = vld [vmem:[#allocation11 + $0x32c] sm:$0xf]  ;;  %v2937_v47 = vld [vmem:[#allocation11 + $0x338] sm:$0xf0] }
 0x15c   :  { %v2100_v48 = vadd.f32 %v2099_v0, %v2087_v37  ;;  %v2940_v56 = vor.u32 %v3658_v46, %v2937_v47  ;;  %v3113_v0 = vld [vmem:[#allocation11 + $0x498] sm:$0xf0]  ;;  %v3734_v34 = vld [vmem:[#allocation11 + $0x58c] sm:$0xf] }
 0x15d   :  { %2341 = vmatpush.bf16.msra.mxu0 %v2588_v51  ;;  %2354 = vmatpush.bf16.msra.mxu1 %v2716_v52  ;;  %v2062_v43 = vpop.f32.mrf.mxu2  ;;  %v2075_v50 = vpop.f32.mrf.mxu3  ;;  %v3292_v51 = vor.u32 %v3746_v38, %v3289_v39  ;;  %v3710_v52 = vld [vmem:[#allocation11 + $0x4cc] sm:$0xf]  ;;  %v3385_v38 = vld [vmem:[#allocation11 + $0x6b8] sm:$0xf0] }
 0x15e   :  { %v3148_v10 = vor.u32 %v3710_v52, %v3145_v53  ;;  %v3802_v39 = vld [vmem:[#allocation11 + $0x7ac] sm:$0xf]  ;;  %v3097_v43 = vld [vmem:[#allocation11 + $0x478] sm:$0xf0]  ;;  %v3388_v50 = vor.u32 %v3770_v36, %v3385_v38 }
 0x15f   :  { %2366 = vmatpush.bf16.msra.mxu2 %v2860_v57  ;;  %2379 = vmatpush.bf16.msra.mxu3 %v2988_v58  ;;  %v3273_v57 = vld [vmem:[#allocation11 + $0x5d8] sm:$0xf0]  ;;  %v3622_v58 = vld [vmem:[#allocation11 + $0x20c] sm:$0xf] }
 0x160   :  { %v3276_v11 = vor.u32 %v3742_v54, %v3273_v57  ;;  %v2796_v12 = vor.u32 %v3622_v58, %v2793_v2  ;;  %v3225_v52 = vld [vmem:[#allocation11 + $0x578] sm:$0xf0]  ;;  %v3766_v53 = vld [vmem:[#allocation11 + $0x68c] sm:$0xf] }
 0x161   :  { %2342 = vmatpush.bf16.msra.mxu0 %v2572_v7  ;;  %2355 = vmatpush.bf16.msra.mxu1 %v2700_v8  ;;  %v3545_v7 = vld [vmem:[#allocation11 + $0x7f8] sm:$0xf0]  ;;  %v2088_v8 = vpop.f32.mrf.mxu0  ;;  %v2101_v9 = vpop.f32.mrf.mxu1  ;;  %v3754_v38 = vld [vmem:[#allocation11 + $0x62c] sm:$0xf] }
 0x162   :  { %v3548_v21 = vor.u32 %v3810_v5, %v3545_v7  ;;  %v3726_v5 = vld [vmem:[#allocation11 + $0x54c] sm:$0xf]  ;;  %v3209_v7 = vld [vmem:[#allocation11 + $0x558] sm:$0xf0] }
 0x163   :  { %2367 = vmatpush.bf16.msra.mxu2 %v2844_v15  ;;  %2380 = vmatpush.bf16.msra.mxu3 %v2972_v16  ;;  %v2924_v15 = vor.u32 %v3654_v59, %v2921_v3  ;;  %v3706_v16 = vld [vmem:[#allocation11 + $0x4ac] sm:$0xf]  ;;  %v3081_v3 = vld [vmem:[#allocation11 + $0x458] sm:$0xf0] }
 0x164   :  { %v3132_v20 = vor.u32 %v3706_v16, %v3129_v17  ;;  %v3694_v59 = vld [vmem:[#allocation11 + $0x44c] sm:$0xf]  ;;  %v3353_v9 = vld [vmem:[#allocation11 + $0x678] sm:$0xf0]  ;;  %v3212_v17 = vor.u32 %v3726_v5, %v3209_v7 }
 0x165   :  { %2343 = vmatpush.bf16.msra.mxu0 %v2556_v27  ;;  %2356 = vmatpush.bf16.msra.mxu1 %v2684_v28  ;;  %v3529_v27 = vld [vmem:[#allocation11 + $0x7d8] sm:$0xf0]  ;;  %v2112_v28 = vpop.f32.mrf.mxu2  ;;  %v2125_v29 = vpop.f32.mrf.mxu3  ;;  %v3762_v8 = vld [vmem:[#allocation11 + $0x66c] sm:$0xf]  ;;  %v3084_v16 = vor.u32 %v3694_v59, %v3081_v3  ;;  %v4191_v59 = vld [vmem:[%s4213_s7] sm:$0xf] }
 0x166   :  { %v2113_v30 = vadd.f32 %v2112_v28, %v2100_v48  ;;  %v3356_v22 = vor.u32 %v3762_v8, %v3353_v9  ;;  %v3790_v28 = vld [vmem:[#allocation11 + $0x74c] sm:$0xf]  ;;  %v3177_v36 = vld [vmem:[#allocation11 + $0x518] sm:$0xf0] }
 0x167   :  { %2368 = vmatpush.bf16.msra.mxu2 %v2828_v33  ;;  %2381 = vmatpush.bf16.msra.mxu3 %v2956_v1  ;;  %v3404_v33 = vor.u32 %v3774_v24, %v3401_v25  ;;  %v3532_v1 = vor.u32 %v3806_v26, %v3529_v27  ;;  %v3722_v24 = vld [vmem:[#allocation11 + $0x52c] sm:$0xf]  ;;  %v3193_v25 = vld [vmem:[#allocation11 + $0x538] sm:$0xf0] }
 0x168   :  { %v4180_v37 = vadd.f32 %v2125_v29, %v2113_v30  ;;  %v3758_v26 = vld [vmem:[#allocation11 + $0x64c] sm:$0xf]  ;;  %v3337_v27 = vld [vmem:[#allocation11 + $0x658] sm:$0xf0] }
 0x169   :  { %2344 = vmatpush.bf16.msra.mxu0 %v2540_v49  ;;  %2357 = vmatpush.bf16.msra.mxu1 %v2668_v6  ;;  %v2138_v45 = vpop.f32.mrf.mxu0  ;;  %v2151_v46 = vpop.f32.mrf.mxu1  ;;  %v3244_v49 = vor.u32 %v3734_v34, %v3241_v35  ;;  %v3698_v6 = vld [vmem:[#allocation11 + $0x46c] sm:$0xf]  ;;  %v3465_v29 = vld [vmem:[#allocation11 + $0x758] sm:$0xf0] }
 0x16a   :  { %v3100_v58 = vor.u32 %v3698_v6, %v3097_v43  ;;  %v3468_v34 = vor.u32 %v3790_v28, %v3465_v29  ;;  %v3718_v35 = vld [vmem:[#allocation11 + $0x50c] sm:$0xf] }
 0x16b   :  { %2369 = vmatpush.bf16.msra.mxu2 %v2812_v55  ;;  %2382 = vmatpush.bf16.msra.mxu3 %v2940_v56  ;;  %v3798_v55 = vld [vmem:[#allocation11 + $0x78c] sm:$0xf] }
 0x16c   :  { %2345 = vmatmul.bf16.vlgmr.msra.gmra.mxu0 %v4121_v31  ;;  %2358 = vmatmul.bf16.vlgmr.msra.gmra.mxu1 %v4123_v19  ;;  %v738_v31 = vperm.slane %v4170_v63, 1  ;;  %v3702_v19 = vld [vmem:[#allocation11 + $0x48c] sm:$0xf] }
 0x16d   :  { %2389 = vmatpush.bf16.msrb.mxu0 %v3164_v44  ;;  %2402 = vmatpush.bf16.msrb.mxu1 %v3292_v51  ;;  %v3116_v48 = vor.u32 %v3702_v19, %v3113_v0  ;;  %v3516_v44 = vor.u32 %v3802_v39, %v3513_v42  ;;  %v3730_v51 = vld [vmem:[#allocation11 + $0x56c] sm:$0xf]  ;;  %v2114_v56 = vpop.f32.mrf.mxu2  ;;  %v2127_v57 = vpop.f32.mrf.mxu3  ;;  %v3049_v0 = vld [vmem:[#allocation11 + $0x418] sm:$0xf0] }
 0x16e   :  { %v2139_v47 = vadd.f32 %v2138_v45, %v738_v31  ;;  %v3228_v2 = vor.u32 %v3730_v51, %v3225_v52  ;;  %v3196_v31 = vor.u32 %v3722_v24, %v3193_v25  ;;  %v3686_v19 = vld [vmem:[#allocation11 + $0x40c] sm:$0xf]  ;;  %v3321_v39 = vld [vmem:[#allocation11 + $0x638] sm:$0xf0] }
 0x16f   :  { %2370 = vmatpush.bf16.msra.mxu2 %v2796_v12  ;;  %2383 = vmatpush.bf16.msra.mxu3 %v2924_v15  ;;  %v3786_v42 = vld [vmem:[#allocation11 + $0x72c] sm:$0xf]  ;;  %v3449_v45 = vld [vmem:[#allocation11 + $0x738] sm:$0xf0] }
 0x170   :  { %v2152_v54 = vadd.f32 %v2151_v46, %v2139_v47  ;;  %v3052_v47 = vor.u32 %v3686_v19, %v3049_v0  ;;  %v3452_v6 = vor.u32 %v3786_v42, %v3449_v45  ;;  %v3750_v43 = vld [vmem:[#allocation11 + $0x60c] sm:$0xf]  ;;  %v3433_v51 = vld [vmem:[#allocation11 + $0x718] sm:$0xf0] }
 0x171   :  { %2390 = vmatpush.bf16.msrb.mxu0 %v3148_v10  ;;  %2403 = vmatpush.bf16.msrb.mxu1 %v3276_v11  ;;  %v3794_v10 = vld [vmem:[#allocation11 + $0x76c] sm:$0xf]  ;;  %v3481_v11 = vld [vmem:[#allocation11 + $0x778] sm:$0xf0]  ;;  %v2140_v12 = vpop.f32.mrf.mxu0  ;;  %v2153_v15 = vpop.f32.mrf.mxu1 }
 0x172   :  { %2371 = vmatmul.bf16.vlgmr.msra.gmra.mxu2 %v4130_v60  ;;  %2384 = vmatmul.bf16.vlgmr.msra.gmra.mxu3 %v4132_v61  ;;  %v3369_v60 = vld [vmem:[#allocation11 + $0x698] sm:$0xf0]  ;;  %v3484_v23 = vor.u32 %v3794_v10, %v3481_v11  ;;  %v739_v12 = vperm.slane %v4170_v63, 2 }
 0x173   :  { %2415 = vmatpush.bf16.msrb.mxu2 %v3420_v18  ;;  %2428 = vmatpush.bf16.msrb.mxu3 %v3548_v21  ;;  %v3497_v61 = vld [vmem:[#allocation11 + $0x798] sm:$0xf0]  ;;  %v3372_v62 = vor.u32 %v3766_v53, %v3369_v60  ;;  %v3690_v18 = vld [vmem:[#allocation11 + $0x42c] sm:$0xf] }
 0x174   :  { %v3500_v4 = vor.u32 %v3798_v55, %v3497_v61  ;;  %v3065_v21 = vld [vmem:[#allocation11 + $0x438] sm:$0xf0] }
 0x175   :  { %2391 = vmatpush.bf16.msrb.mxu0 %v3132_v20  ;;  %2404 = vmatpush.bf16.msrb.mxu1 %v3260_v32  ;;  %v2164_v30 = vpop.f32.mrf.mxu2  ;;  %v2177_v20 = vpop.f32.mrf.mxu3  ;;  %v3068_v32 = vor.u32 %v3690_v18, %v3065_v21 }
 0x177   :  { %2416 = vmatpush.bf16.msrb.mxu2 %v3404_v33  ;;  %2429 = vmatpush.bf16.msrb.mxu3 %v3532_v1  ;;  %v2165_v33 = vadd.f32 %v2164_v30, %v2152_v54  ;;  %v3340_v1 = vor.u32 %v3758_v26, %v3337_v27 }
 0x179   :  { %2392 = vmatpush.bf16.msrb.mxu0 %v3116_v48  ;;  %2405 = vmatpush.bf16.msrb.mxu1 %v3244_v49  ;;  %v2178_v46 = vadd.f32 %v2177_v20, %v2165_v33  ;;  %v3180_v48 = vor.u32 %v3718_v35, %v3177_v36  ;;  %v3324_v49 = vor.u32 %v3754_v38, %v3321_v39 }
 0x17b   :  { %2417 = vmatpush.bf16.msrb.mxu2 %v3388_v50  ;;  %2430 = vmatpush.bf16.msrb.mxu3 %v3516_v44  ;;  %v3305_v50 = vld [vmem:[#allocation11 + $0x618] sm:$0xf0]  ;;  %v3782_v44 = vld [vmem:[#allocation11 + $0x70c] sm:$0xf] }
 0x17c   :  { %v3308_v54 = vor.u32 %v3750_v43, %v3305_v50  ;;  %v3436_v60 = vor.u32 %v3782_v44, %v3433_v51  ;;  %v740_v43 = vperm.slane %v4170_v63, 3 }
 0x17d   :  { %2393 = vmatpush.bf16.msrb.mxu0 %v3100_v58  ;;  %2406 = vmatpush.bf16.msrb.mxu1 %v3228_v2  ;;  %v2166_v52 = vpop.f32.mrf.mxu2  ;;  %v2179_v53 = vpop.f32.mrf.mxu3 }
 0x17f   :  { %2418 = vmatpush.bf16.msrb.mxu2 %v3372_v62  ;;  %2431 = vmatpush.bf16.msrb.mxu3 %v3500_v4  ;;  %v2441_v62 = vmax.f32 %v4180_v37, 0.0 }
 0x181   :  { %2394 = vmatpush.bf16.msrb.mxu0 %v3084_v16  ;;  %2407 = vmatpush.bf16.msrb.mxu1 %v3212_v17 }
 0x183   :  { %2419 = vmatpush.bf16.msrb.mxu2 %v3356_v22  ;;  %2432 = vmatpush.bf16.msrb.mxu3 %v3484_v23 }
 0x185   :  { %2395 = vmatpush.bf16.msrb.mxu0 %v3068_v32  ;;  %2408 = vmatpush.bf16.msrb.mxu1 %v3196_v31 }
 0x187   :  { %2420 = vmatpush.bf16.msrb.mxu2 %v3340_v1  ;;  %2433 = vmatpush.bf16.msrb.mxu3 %v3468_v34  ;;  %v2449_v34 = vperm.slane %v4191_v59, 2 }
 0x189   :  { %2396 = vmatpush.bf16.msrb.mxu0 %v3052_v47  ;;  %2409 = vmatpush.bf16.msrb.mxu1 %v3180_v48  ;;  %v2190_v55 = vpop.f32.mrf.mxu0  ;;  %v2203_v61 = vpop.f32.mrf.mxu1 }
 0x18a   :  { %v2191_v56 = vadd.f32 %v2190_v55, %v2178_v46 }
 0x18b   :  { %2421 = vmatpush.bf16.msrb.mxu2 %v3324_v49  ;;  %2434 = vmatpush.bf16.msrb.mxu3 %v3452_v6 }
 0x18c   :  { %2397 = vmatmul.bf16.vlgmr.msrb.gmra.mxu0 %v4141_v40  ;;  %2410 = vmatmul.bf16.vlgmr.msrb.gmra.mxu1 %v4143_v41  ;;  %v2204_v57 = vadd.f32 %v2203_v61, %v2191_v56 }
 0x18f   :  { %2422 = vmatpush.bf16.msrb.mxu2 %v3308_v54  ;;  %2435 = vmatpush.bf16.msrb.mxu3 %v3436_v60 }
 0x191   :  { %v2192_v58 = vpop.f32.mrf.mxu0  ;;  %v2205_v2 = vpop.f32.mrf.mxu1 }
 0x192   :  { %2423 = vmatmul.bf16.vlgmr.msrb.gmra.mxu2 %v4149_v13  ;;  %2436 = vmatmul.bf16.vlgmr.msrb.gmra.mxu3 %v4151_v14  ;;  %v2447_v13 = vperm.slane %v4191_v59, 0  ;;  %v2448_v14 = vperm.slane %v4191_v59, 1 }
 0x194   :  { %v2455_v7 = vmul.f32 %v2447_v13, %v2441_v62  ;;  %v2450_v62 = vperm.slane %v4191_v59, 3 }
 0x195   :  { %v2216_v40 = vpop.f32.mrf.mxu2  ;;  %v2229_v3 = vpop.f32.mrf.mxu3 }
 0x196   :  { %v2217_v41 = vadd.f32 %v2216_v40, %v2204_v57 }
 0x198   :  { %v2230_v4 = vadd.f32 %v2229_v3, %v2217_v41 }
 0x19a   :  { %v2442_v5 = vmax.f32 %v2230_v4, 0.0 }
 0x19c   :  { %v2456_v8 = vmul.f32 %v2448_v14, %v2442_v5 }
 0x19d   :  { %v2218_v9 = vpop.f32.mrf.mxu2  ;;  %v2231_v10 = vpop.f32.mrf.mxu3 }
 0x19e   :  { %v2459_v11 = vadd.f32 %v2456_v8, %v2455_v7  ;;  %v2465_v7 = vstv %s4214_s8 }
 0x1a9   :  { %v2242_v15 = vpop.f32.mrf.mxu0  ;;  %v2255_v16 = vpop.f32.mrf.mxu1 }
 0x1aa   :  { %v2243_v17 = vadd.f32 %v2242_v15, %v739_v12 }
 0x1ac   :  { %v2256_v18 = vadd.f32 %v2255_v16, %v2243_v17 }
 0x1b1   :  { %v2244_v21 = vpop.f32.mrf.mxu0  ;;  %v2257_v22 = vpop.f32.mrf.mxu1 }
 0x1b5   :  { %v2268_v37 = vpop.f32.mrf.mxu2  ;;  %v2281_v23 = vpop.f32.mrf.mxu3 }
 0x1b6   :  { %v2269_v24 = vadd.f32 %v2268_v37, %v2256_v18 }
 0x1b8   :  { %v2282_v25 = vadd.f32 %v2281_v23, %v2269_v24 }
 0x1bd   :  { %v2270_v26 = vpop.f32.mrf.mxu2  ;;  %v2283_v27 = vpop.f32.mrf.mxu3 }
 0x1c9   :  { %v2294_v28 = vpop.f32.mrf.mxu0  ;;  %v2307_v29 = vpop.f32.mrf.mxu1 }
 0x1ca   :  { %v2295_v30 = vadd.f32 %v2294_v28, %v2282_v25 }
 0x1cc   :  { %v2308_v20 = vadd.f32 %v2307_v29, %v2295_v30 }
 0x1d1   :  { %v2296_v32 = vpop.f32.mrf.mxu0  ;;  %v2309_v31 = vpop.f32.mrf.mxu1 }
 0x1d5   :  { %v2320_v19 = vpop.f32.mrf.mxu2  ;;  %v2333_v0 = vpop.f32.mrf.mxu3 }
 0x1d6   :  { %v2321_v33 = vadd.f32 %v2320_v19, %v2308_v20 }
 0x1d8   :  { %v2334_v1 = vadd.f32 %v2333_v0, %v2321_v33 }
 0x1da   :  { %v2443_v35 = vmax.f32 %v2334_v1, 0.0 }
 0x1dc   :  { %v2457_v36 = vmul.f32 %v2449_v34, %v2443_v35 }
 0x1dd   :  { %v2322_v38 = vpop.f32.mrf.mxu2  ;;  %v2335_v39 = vpop.f32.mrf.mxu3 }
 0x1de   :  { %v2460_v42 = vadd.f32 %v2459_v11, %v2457_v36 }
 0x1e9   :  { %v2346_v45 = vpop.f32.mrf.mxu0  ;;  %v2359_v46 = vpop.f32.mrf.mxu1 }
 0x1ea   :  { %v2347_v51 = vadd.f32 %v2346_v45, %v740_v43 }
 0x1ec   :  { %v2360_v52 = vadd.f32 %v2359_v46, %v2347_v51 }
 0x1f1   :  { %v2348_v47 = vpop.f32.mrf.mxu0  ;;  %v2361_v48 = vpop.f32.mrf.mxu1 }
 0x1f5   :  { %v2372_v49 = vpop.f32.mrf.mxu2  ;;  %v2385_v6 = vpop.f32.mrf.mxu3 }
 0x1f6   :  { %v2373_v53 = vadd.f32 %v2372_v49, %v2360_v52 }
 0x1f8   :  { %v2386_v55 = vadd.f32 %v2385_v6, %v2373_v53 }
 0x1fd   :  { %v2374_v50 = vpop.f32.mrf.mxu2  ;;  %v2387_v44 = vpop.f32.mrf.mxu3 }
 0x209   :  { %v2398_v54 = vpop.f32.mrf.mxu0  ;;  %v2411_v60 = vpop.f32.mrf.mxu1 }
 0x20a   :  { %v2399_v61 = vadd.f32 %v2398_v54, %v2386_v55 }
 0x20c   :  { %v2412_v58 = vadd.f32 %v2411_v60, %v2399_v61 }
 0x211   :  { %v2400_v56 = vpop.f32.mrf.mxu0  ;;  %v2413_v57 = vpop.f32.mrf.mxu1 }
 0x215   :  { %v2424_v2 = vpop.f32.mrf.mxu2  ;;  %v2437_v40 = vpop.f32.mrf.mxu3 }
 0x216   :  { %v2425_v3 = vadd.f32 %v2424_v2, %v2412_v58 }
 0x218   :  { %v2438_v41 = vadd.f32 %v2437_v40, %v2425_v3 }
 0x21a   :  { %v2444_v13 = vmax.f32 %v2438_v41, 0.0 }
 0x21c   :  { %v2458_v63 = vmul.f32 %v2450_v62, %v2444_v13 }
 0x21d   :  { %v2426_v4 = vpop.f32.mrf.mxu2  ;;  %v2439_v14 = vpop.f32.mrf.mxu3 }
 0x21e   :  { %v2461_v5 = vadd.f32 %v2460_v42, %v2458_v63 }
 0x220   :  { %2462 = vadd.xlane.f32.xlu0 %v2461_v5 }
 0x293   :  { %v2463_v8 = vpop.xlane.xlu0 %2462 }
 0x294   :  { %v2466_v9 = vadd.f32 %v2465_v7, %v2463_v8 }
 0x296   :  { %2468 = vst.msk [vmem:[%s4215_s9] sm:$0xff] %vm2467_vm3, %v2466_v9 }
 0x297   :  { %2473 = vsyncpa [#allocation4], 1 }
 0x298   :  { %2474 = vsyncpa [#allocation6], 1 }
 0x299   :  { %2475 = vsyncpa [#allocation9], 1 }
 0x29a   :  { %2476 = vsyncpa [#allocation12], 1 }

</bundles_post_ra>
